<compile_context>
chip_gen: v6e
topology: v6e:2x2x1
jax: 0.10.0
libtpu: 0.0.40
codegen_flags: <defaults>
</compile_context>

<pallas_src>
import functools

import numpy as np
import jax
import jax.numpy as jnp
from jax.experimental import pallas as pl
from jax.experimental.pallas import tpu as pltpu

# ------------------------------------------------------------------ config
# Synthetic network dimensions (model_para equivalents).
C_IN = 4          # input_shape[0]  (frequency channels)
ENC0 = 8          # encoder_channels[0]
ENC1 = 16         # encoder_channels[1] == tcn_2_channels
INTER = 8         # output_intermediate_channels
OUT_CHAN = 1      # output_channels
KSIZE = 3         # encoder / tcn / output kernel size
STRIDE = 2        # encoder_stride (encoder_pooling = 1)
DOWN_FAC = STRIDE ** 2          # two encoder levels
BIAS = 0.0                      # clamp[0] (reference default clamp=[0,-1000,1000])
CLAMP = (-1000.0, 1000.0)       # clamp[1:]
PAD_C0 = 8        # column where the stacked read-window starts in the scratch


# ------------------------------------------------------------------ layout
def _build_layout(B, c_in, L):
    """Row layout of the packed weight slab (all row offsets multiples of 8)."""
    lay = {}
    r = 0

    def add(name, n):
        nonlocal r
        lay[name] = (r, n)
        r += ((n + 7) // 8) * 8

    add("enc0", B * ENC0)
    add("enc1", B * ENC1)
    add("tcn0a", B * ENC1)
    add("tcn0b", B * ENC1)
    add("tcn1a", B * ENC1)
    add("tcn1b", B * ENC1)
    add("out0", B * INTER)
    add("out1", B * OUT_CHAN)
    add("dm0", B * c_in)          # (I - per-batch channel average)
    add("cls", 4)                 # 3 weight rows + 1 bias row
    add("sel0", L)                # stride-2 selection, encoder level 0
    add("sel1", L // 2)           # stride-2 selection, encoder level 1
    return lay, r


def _conv_table():
    """Static per-conv config: kernel, dilation, pad, activation, stride-sel."""
    return {
        "enc0":  dict(k=KSIZE, dil=1, pad=(1, 1), act="relu",    sel="sel0"),
        "enc1":  dict(k=KSIZE, dil=1, pad=(1, 1), act="relu",    sel="sel1"),
        "tcn0a": dict(k=KSIZE, dil=1, pad=(2, 0), act="relu",    sel=None),
        "tcn0b": dict(k=KSIZE, dil=1, pad=(2, 0), act="linear",  sel=None),
        "tcn1a": dict(k=KSIZE, dil=2, pad=(4, 0), act="relu",    sel=None),
        "tcn1b": dict(k=KSIZE, dil=2, pad=(4, 0), act="linear",  sel=None),
        "out0":  dict(k=KSIZE, dil=1, pad=(1, 1), act="relu",    sel=None),
        "out1":  dict(k=1,     dil=1, pad=(0, 0), act="sigmoid", sel=None),
    }


# ------------------------------------------------------------------ kernel
def _pulsar_fused_kernel(x_ref, w_ref, out_ref, pad_ref, *,
                         lay, convs, bias, clamp_lo, clamp_hi,
                         dm0_subtract, l_out):
    f32 = jnp.float32

    def conv(h, name):
        cfg = convs[name]
        r_in, L = h.shape
        K, d = cfg["k"], cfg["dil"]
        p_l, p_r = cfg["pad"]
        kr = K * r_in
        if K == 1 and p_l == 0 and p_r == 0:
            hstack = h                                  # 1x1 conv: no stacking
        else:
            # Tap-stacked operand built in the zero-padded VMEM scratch:
            # row-block k holds h shifted by (p_l - k*dil) lanes; one aligned
            # load of the read window returns all K taps stacked on the
            # sublane axis (no value-level concatenate, no jnp.pad).
            if p_l:
                pad_ref[0:kr, PAD_C0:PAD_C0 + p_l] = jnp.zeros((kr, p_l), f32)
            if p_r:
                pad_ref[0:kr, PAD_C0 + L - p_r:PAD_C0 + L] = (
                    jnp.zeros((kr, p_r), f32))
            for k in range(K):
                c = PAD_C0 + p_l - k * d
                pad_ref[k * r_in:(k + 1) * r_in, c:c + L] = h
            hstack = pad_ref[0:kr, PAD_C0:PAD_C0 + L]   # (K*r_in, L)

        r0, r_out = lay[name]
        acc = jnp.dot(w_ref[r0:r0 + r_out, 0:kr], hstack,
                      preferred_element_type=f32)       # one MXU matmul / conv
        if cfg["sel"] is not None:                      # stride-2 downsample
            s0, _ = lay[cfg["sel"]]
            acc = jnp.dot(acc, w_ref[s0:s0 + L, 0:L // 2],
                          preferred_element_type=f32)
        acc = acc + w_ref[r0:r0 + r_out, 127:128]       # bias column
        if cfg["act"] == "relu":
            acc = jnp.maximum(acc, 0.0)
        elif cfg["act"] == "sigmoid":
            acc = jax.nn.sigmoid(acc)
        return acc

    # ---- Preprocess: per-(batch,channel) norm over time, bias, DM0, clamp
    x = x_ref[...].astype(f32)                          # (B*C_in, L)
    mean = jnp.mean(x, axis=-1, keepdims=True)
    var = jnp.mean((x - mean) ** 2, axis=-1, keepdims=True)
    x = (x - mean) * jax.lax.rsqrt(var + 1e-5) + bias
    if dm0_subtract:
        d0, dn = lay["dm0"]
        # (I - per-batch channel average) folded into one tiny matmul
        x = jnp.dot(w_ref[d0:d0 + dn, 0:dn], x, preferred_element_type=f32)
    x = jnp.clip(x, clamp_lo, clamp_hi)

    # ---- Encoder: two strided conv blocks (stride 2, K=3, ReLU)
    h = conv(x, "enc0")                                 # (B*ENC0, L/2)
    h = conv(h, "enc1")                                 # (B*ENC1, L/4)

    # ---- TemporalConvNet_multi: two dilated causal residual blocks
    r = conv(h, "tcn0a")
    r = conv(r, "tcn0b")
    h = jnp.maximum(h + r, 0.0)
    r = conv(h, "tcn1a")
    r = conv(r, "tcn1b")
    h = jnp.maximum(h + r, 0.0)

    # ---- OutputLayer: conv -> ReLU -> 1x1 conv -> sigmoid
    o = conv(h, "out0")                                 # (B*INTER, L/4)
    enc = conv(o, "out1")                               # (B*OUT_CHAN, L/4)

    # ---- Pooling classifier: [mean, max, mean-square] over time -> 3x3 linear
    f_mean = jnp.mean(enc, axis=-1, keepdims=True)
    f_max = jnp.max(enc, axis=-1, keepdims=True)
    f_sq = jnp.mean(enc * enc, axis=-1, keepdims=True)
    c0, _ = lay["cls"]
    wt = w_ref[c0:c0 + 3, 0:3]                          # (3 feats, 3 outs)
    cb = w_ref[c0 + 3:c0 + 4, 0:3]
    y = f_mean * wt[0:1, :] + f_max * wt[1:2, :] + f_sq * wt[2:3, :] + cb

    # ---- Single lane-dense output slab: enc in cols [0, l_out),
    #      classifier in cols [l_out, l_out+3), rest zeroed.
    out_ref[...] = jnp.zeros_like(out_ref)
    out_ref[:, 0:l_out] = enc
    out_ref[:, l_out:l_out + 3] = y


# ------------------------------------------------------------------ packing
def pack_params(params, B, c_in, L):
    """One-time host-side packing of all weights/biases/constants into a
    single lane-dense (rows, 128) f32 slab (one HBM->VMEM DMA per call)."""
    lay, total = _build_layout(B, c_in, L)
    slab = np.zeros((total, 128), np.float32)
    eye_b = np.eye(B, dtype=np.float32)

    def put_conv(name, w, b):
        w = np.asarray(w, np.float32)                   # (c_out, c_in, K)
        b = np.asarray(b, np.float32)
        k = w.shape[2]
        # per-batch block-diagonal, tap-stacked: (B*c_out, K*B*c_in)
        wflat = np.concatenate(
            [np.kron(eye_b, w[:, :, kk]) for kk in range(k)], axis=1)
        r0, n = lay[name]
        slab[r0:r0 + n, 0:wflat.shape[1]] = wflat
        slab[r0:r0 + n, 127] = np.tile(b, B)            # bias column

    put_conv("enc0", params["enc_w0"], params["enc_b0"])
    put_conv("enc1", params["enc_w1"], params["enc_b1"])
    put_conv("tcn0a", params["tcn_w0a"], params["tcn_b0a"])
    put_conv("tcn0b", params["tcn_w0b"], params["tcn_b0b"])
    put_conv("tcn1a", params["tcn_w1a"], params["tcn_b1a"])
    put_conv("tcn1b", params["tcn_w1b"], params["tcn_b1b"])
    put_conv("out0", params["out_w0"], params["out_b0"])
    put_conv("out1", params["out_w1"], params["out_b1"])

    # (I - per-batch channel mean) matrix for the DM0 subtraction
    r0, n = lay["dm0"]
    slab[r0:r0 + n, 0:n] = (
        np.eye(n, dtype=np.float32)
        - np.kron(eye_b, np.full((c_in, c_in), 1.0 / c_in, np.float32)))

    # classifier 3x3 linear (transposed) + bias row
    r0, _ = lay["cls"]
    slab[r0:r0 + 3, 0:3] = np.asarray(params["cls_w"], np.float32).T
    slab[r0 + 3, 0:3] = np.asarray(params["cls_b"], np.float32)

    # stride-2 selection matrices (precomputed; no in-kernel iota)
    def sel(n):
        s = np.zeros((n, n // 2), np.float32)
        s[np.arange(0, n, 2), np.arange(n // 2)] = 1.0
        return s

    r0, _ = lay["sel0"]
    slab[r0:r0 + L, 0:L // 2] = sel(L)
    r0, _ = lay["sel1"]
    slab[r0:r0 + L // 2, 0:L // 4] = sel(L // 2)
    return jnp.asarray(slab)


# ------------------------------------------------------------------ forward
def pulsar_net_forward(wslab, x, mode="full"):
    """pulsar_net.forward (mode='full', crop=0, no candidates, single
    classifier, output_channels=1) as ONE fused Pallas call."""
    empty = jnp.zeros((0,), jnp.float32)                # torch.empty(0) analogue
    B, C, L = x.shape
    l_out = L // DOWN_FAC
    lay, total_rows = _build_layout(B, C, L)
    assert wslab.shape == (total_rows, 128)
    assert OUT_CHAN == 1   # single-channel output head (class_channel_output=1)

    # batch folded onto the sublane (row) axis
    x2 = x.reshape(B * C, L).astype(jnp.float32)

    kern = functools.partial(
        _pulsar_fused_kernel,
        lay=lay, convs=_conv_table(),
        bias=BIAS, clamp_lo=CLAMP[0], clamp_hi=CLAMP[1],
        dm0_subtract=True, l_out=l_out)

    out = pl.pallas_call(
        kern,
        out_shape=jax.ShapeDtypeStruct((B * OUT_CHAN, 128), jnp.float32),
        scratch_shapes=[pltpu.VMEM((KSIZE * B * ENC1, 128), jnp.float32)],
        compiler_params=pltpu.CompilerParams(vmem_limit_bytes=16 * 1024 * 1024),
    )(x2, wslab)

    encoded = out[:, :l_out].reshape(B, OUT_CHAN, l_out)

    if mode == "dedisperse":
        return encoded, empty, empty, (empty, empty)

    # use_multi_class == 0, cand_based == False -> class_tensor[:, 0, :, :]
    class_out = out[:, l_out:l_out + 3].reshape(B, 3, OUT_CHAN)
    return encoded, class_out, empty, (empty, empty)
    # TODO(synk): MultiClass combiner, candidate_creator and the FFA/STFT
    # classifier internals depend on external config files / submodules and
    # are replaced by the synthetic pooling classifier above.


# ------------------------------------------------------------------ params
def init_params(key, c_in=C_IN, enc0=ENC0, enc1=ENC1, inter=INTER,
                out_chan=OUT_CHAN):
    keys = jax.random.split(key, 18)

    def w(k, shape):
        return 0.1 * jax.random.normal(k, shape, jnp.float32)

    return {
        "enc_w0": w(keys[0], (enc0, c_in, 3)),   "enc_b0": w(keys[1], (enc0,)),
        "enc_w1": w(keys[2], (enc1, enc0, 3)),   "enc_b1": w(keys[3], (enc1,)),
        "tcn_w0a": w(keys[4], (enc1, enc1, 3)),  "tcn_b0a": w(keys[5], (enc1,)),
        "tcn_w0b": w(keys[6], (enc1, enc1, 3)),  "tcn_b0b": w(keys[7], (enc1,)),
        "tcn_w1a": w(keys[8], (enc1, enc1, 3)),  "tcn_b1a": w(keys[9], (enc1,)),
        "tcn_w1b": w(keys[10], (enc1, enc1, 3)), "tcn_b1b": w(keys[11], (enc1,)),
        "out_w0": w(keys[12], (inter, enc1, 3)), "out_b0": w(keys[13], (inter,)),
        "out_w1": w(keys[14], (out_chan, inter, 1)),
        "out_b1": w(keys[15], (out_chan,)),
        "cls_w": w(keys[16], (3, 3 * out_chan)),
        "cls_b": w(keys[17], (3,)),
    }


# ------------------------------------------------------------------ main
if __name__ == "__main__":
    key = jax.random.PRNGKey(0)
    kx, kp = jax.random.split(key)

    B, L = 2, 64                                  # input_shape = (C_IN, L)
    x = jax.random.normal(kx, (B, C_IN, L), jnp.float32)
    params = init_params(kp)

    # one-time host-side packing: all weights/constants ride a single DMA
    wslab = pack_params(params, B=B, c_in=C_IN, L=L)

    fwd = jax.jit(functools.partial(pulsar_net_forward, mode="full"))
    encoded, class_out, single, (cands, cand_tgts) = fwd(wslab, x)
    jax.block_until_ready((encoded, class_out, single, cands, cand_tgts))

    assert encoded.shape == (B, OUT_CHAN, L // DOWN_FAC)   # out_length = L/4
    assert class_out.shape == (B, 3, OUT_CHAN)             # (final_output, chan)
    assert single.shape == (0,) and cands.shape == (0,)
    print("KERNEL_OK")
</pallas_src>

<mosaic_0001>
module attributes {stable_mosaic.version = 11 : i64} {
  func.func @_pulsar_fused_kernel(%arg0: memref<8x64xf32, #tpu.memory_space<vmem>>, %arg1: memref<312x128xf32, #tpu.memory_space<vmem>>, %arg2: memref<2x128xf32, #tpu.memory_space<vmem>>, %arg3: memref<96x128xf32, #tpu.memory_space<vmem>>) attributes {dimension_semantics = [], scalar_prefetch = 0 : i64, scratch_operands = 1 : i64, tpu.core_type = #tpu.core_type<tc>} {
    %c0 = arith.constant 0 : index
    %c0_0 = arith.constant 0 : index
    %0 = vector.load %arg0[%c0, %c0_0] : memref<8x64xf32, #tpu.memory_space<vmem>>, vector<8x64xf32>
    %cst = arith.constant dense<0.000000e+00> : vector<8xf32>
    %1 = vector.multi_reduction <add>, %0, %cst [1] : vector<8x64xf32> to vector<8xf32>
    %2 = vector.shape_cast %1 : vector<8xf32> to vector<8x1xf32>
    %cst_1 = arith.constant 6.400000e+01 : f32
    %3 = vector.broadcast %cst_1 : f32 to vector<8x1xf32>
    %4 = arith.divf %2, %3 : vector<8x1xf32>
    %5 = vector.broadcast %4 : vector<8x1xf32> to vector<8x64xf32>
    %6 = arith.subf %0, %5 : vector<8x64xf32>
    %7 = arith.mulf %6, %6 : vector<8x64xf32>
    %cst_2 = arith.constant dense<0.000000e+00> : vector<8xf32>
    %8 = vector.multi_reduction <add>, %7, %cst_2 [1] : vector<8x64xf32> to vector<8xf32>
    %9 = vector.shape_cast %8 : vector<8xf32> to vector<8x1xf32>
    %cst_3 = arith.constant 6.400000e+01 : f32
    %10 = vector.broadcast %cst_3 : f32 to vector<8x1xf32>
    %11 = arith.divf %9, %10 : vector<8x1xf32>
    %12 = vector.broadcast %4 : vector<8x1xf32> to vector<8x64xf32>
    %13 = arith.subf %0, %12 : vector<8x64xf32>
    %cst_4 = arith.constant 9.99999974E-6 : f32
    %14 = vector.broadcast %cst_4 : f32 to vector<8x1xf32>
    %15 = arith.addf %11, %14 : vector<8x1xf32>
    %16 = math.rsqrt %15 : vector<8x1xf32>
    %17 = vector.broadcast %16 : vector<8x1xf32> to vector<8x64xf32>
    %18 = arith.mulf %13, %17 : vector<8x64xf32>
    %cst_5 = arith.constant 0.000000e+00 : f32
    %19 = vector.broadcast %cst_5 : f32 to vector<8x64xf32>
    %20 = arith.addf %18, %19 : vector<8x64xf32>
    %c200 = arith.constant 200 : index
    %c0_6 = arith.constant 0 : index
    %21 = vector.load %arg1[%c200, %c0_6] : memref<312x128xf32, #tpu.memory_space<vmem>>, vector<8x8xf32>
    %cst_7 = arith.constant dense<0.000000e+00> : vector<8x64xf32>
    %22 = tpu.matmul %21, %20, %cst_7 {dimension_numbers = #tpu.dot_dimension_numbers<[1], [0], [0], [1], [0, 0, 1, 1], [], []>} : vector<8x8xf32>, vector<8x64xf32>, vector<8x64xf32> -> vector<8x64xf32>
    %cst_8 = arith.constant -1.000000e+03 : f32
    %cst_9 = arith.constant 1.000000e+03 : f32
    %23 = vector.broadcast %cst_8 : f32 to vector<8x64xf32>
    %24 = arith.maximumf %23, %22 : vector<8x64xf32>
    %25 = vector.broadcast %cst_9 : f32 to vector<8x64xf32>
    %26 = arith.minimumf %25, %24 : vector<8x64xf32>
    %cst_10 = arith.constant 0.000000e+00 : f32
    %27 = vector.broadcast %cst_10 : f32 to vector<24x1xf32>
    %c0_11 = arith.constant 0 : index
    %c8 = arith.constant 8 : index
    %28 = vector.load %arg3[%c0_11, %c8] : memref<96x128xf32, #tpu.memory_space<vmem>>, vector<24x1xf32>
    tpu.vector_store %arg3[%c0_11, %c8], %27 {strides = array<i32>} : memref<96x128xf32, #tpu.memory_space<vmem>>, vector<24x1xf32>,
    %cst_12 = arith.constant 0.000000e+00 : f32
    %29 = vector.broadcast %cst_12 : f32 to vector<24x1xf32>
    %c0_13 = arith.constant 0 : index
    %c71 = arith.constant 71 : index
    %30 = vector.load %arg3[%c0_13, %c71] : memref<96x128xf32, #tpu.memory_space<vmem>>, vector<24x1xf32>
    tpu.vector_store %arg3[%c0_13, %c71], %29 {strides = array<i32>} : memref<96x128xf32, #tpu.memory_space<vmem>>, vector<24x1xf32>,
    %c0_14 = arith.constant 0 : index
    %c9 = arith.constant 9 : index
    %31 = vector.load %arg3[%c0_14, %c9] : memref<96x128xf32, #tpu.memory_space<vmem>>, vector<8x64xf32>
    tpu.vector_store %arg3[%c0_14, %c9], %26 {strides = array<i32>} : memref<96x128xf32, #tpu.memory_space<vmem>>, vector<8x64xf32>,
    %c8_15 = arith.constant 8 : index
    %c8_16 = arith.constant 8 : index
    %32 = vector.load %arg3[%c8_15, %c8_16] : memref<96x128xf32, #tpu.memory_space<vmem>>, vector<8x64xf32>
    tpu.vector_store %arg3[%c8_15, %c8_16], %26 {strides = array<i32>} : memref<96x128xf32, #tpu.memory_space<vmem>>, vector<8x64xf32>,
    %c16 = arith.constant 16 : index
    %c7 = arith.constant 7 : index
    %33 = vector.load %arg3[%c16, %c7] : memref<96x128xf32, #tpu.memory_space<vmem>>, vector<8x64xf32>
    tpu.vector_store %arg3[%c16, %c7], %26 {strides = array<i32>} : memref<96x128xf32, #tpu.memory_space<vmem>>, vector<8x64xf32>,
    %c0_17 = arith.constant 0 : index
    %c8_18 = arith.constant 8 : index
    %34 = vector.load %arg3[%c0_17, %c8_18] : memref<96x128xf32, #tpu.memory_space<vmem>>, vector<24x64xf32>
    %c0_19 = arith.constant 0 : index
    %c0_20 = arith.constant 0 : index
    %35 = vector.load %arg1[%c0_19, %c0_20] : memref<312x128xf32, #tpu.memory_space<vmem>>, vector<16x24xf32>
    %cst_21 = arith.constant dense<0.000000e+00> : vector<16x64xf32>
    %36 = tpu.matmul %35, %34, %cst_21 {dimension_numbers = #tpu.dot_dimension_numbers<[1], [0], [0], [1], [0, 0, 1, 1], [], []>} : vector<16x24xf32>, vector<24x64xf32>, vector<16x64xf32> -> vector<16x64xf32>
    %c216 = arith.constant 216 : index
    %c0_22 = arith.constant 0 : index
    %37 = vector.load %arg1[%c216, %c0_22] : memref<312x128xf32, #tpu.memory_space<vmem>>, vector<64x32xf32>
    %cst_23 = arith.constant dense<0.000000e+00> : vector<16x32xf32>
    %38 = tpu.matmul %36, %37, %cst_23 {dimension_numbers = #tpu.dot_dimension_numbers<[1], [0], [0], [1], [0, 0, 1, 1], [], []>} : vector<16x64xf32>, vector<64x32xf32>, vector<16x32xf32> -> vector<16x32xf32>
    %c0_24 = arith.constant 0 : index
    %c127 = arith.constant 127 : index
    %39 = vector.load %arg1[%c0_24, %c127] : memref<312x128xf32, #tpu.memory_space<vmem>>, vector<16x1xf32>
    %40 = vector.broadcast %39 : vector<16x1xf32> to vector<16x32xf32>
    %41 = arith.addf %38, %40 : vector<16x32xf32>
    %cst_25 = arith.constant 0.000000e+00 : f32
    %42 = vector.broadcast %cst_25 : f32 to vector<16x32xf32>
    %43 = arith.maximumf %41, %42 : vector<16x32xf32>
    %cst_26 = arith.constant 0.000000e+00 : f32
    %44 = vector.broadcast %cst_26 : f32 to vector<48x1xf32>
    %c0_27 = arith.constant 0 : index
    %c8_28 = arith.constant 8 : index
    %45 = vector.load %arg3[%c0_27, %c8_28] : memref<96x128xf32, #tpu.memory_space<vmem>>, vector<48x1xf32>
    tpu.vector_store %arg3[%c0_27, %c8_28], %44 {strides = array<i32>} : memref<96x128xf32, #tpu.memory_space<vmem>>, vector<48x1xf32>,
    %cst_29 = arith.constant 0.000000e+00 : f32
    %46 = vector.broadcast %cst_29 : f32 to vector<48x1xf32>
    %c0_30 = arith.constant 0 : index
    %c39 = arith.constant 39 : index
    %47 = vector.load %arg3[%c0_30, %c39] : memref<96x128xf32, #tpu.memory_space<vmem>>, vector<48x1xf32>
    tpu.vector_store %arg3[%c0_30, %c39], %46 {strides = array<i32>} : memref<96x128xf32, #tpu.memory_space<vmem>>, vector<48x1xf32>,
    %c0_31 = arith.constant 0 : index
    %c9_32 = arith.constant 9 : index
    %48 = vector.load %arg3[%c0_31, %c9_32] : memref<96x128xf32, #tpu.memory_space<vmem>>, vector<16x32xf32>
    tpu.vector_store %arg3[%c0_31, %c9_32], %43 {strides = array<i32>} : memref<96x128xf32, #tpu.memory_space<vmem>>, vector<16x32xf32>,
    %c16_33 = arith.constant 16 : index
    %c8_34 = arith.constant 8 : index
    %49 = vector.load %arg3[%c16_33, %c8_34] : memref<96x128xf32, #tpu.memory_space<vmem>>, vector<16x32xf32>
    tpu.vector_store %arg3[%c16_33, %c8_34], %43 {strides = array<i32>} : memref<96x128xf32, #tpu.memory_space<vmem>>, vector<16x32xf32>,
    %c32 = arith.constant 32 : index
    %c7_35 = arith.constant 7 : index
    %50 = vector.load %arg3[%c32, %c7_35] : memref<96x128xf32, #tpu.memory_space<vmem>>, vector<16x32xf32>
    tpu.vector_store %arg3[%c32, %c7_35], %43 {strides = array<i32>} : memref<96x128xf32, #tpu.memory_space<vmem>>, vector<16x32xf32>,
    %c0_36 = arith.constant 0 : index
    %c8_37 = arith.constant 8 : index
    %51 = vector.load %arg3[%c0_36, %c8_37] : memref<96x128xf32, #tpu.memory_space<vmem>>, vector<48x32xf32>
    %c16_38 = arith.constant 16 : index
    %c0_39 = arith.constant 0 : index
    %52 = vector.load %arg1[%c16_38, %c0_39] : memref<312x128xf32, #tpu.memory_space<vmem>>, vector<32x48xf32>
    %cst_40 = arith.constant dense<0.000000e+00> : vector<32x32xf32>
    %53 = tpu.matmul %52, %51, %cst_40 {dimension_numbers = #tpu.dot_dimension_numbers<[1], [0], [0], [1], [0, 0, 1, 1], [], []>} : vector<32x48xf32>, vector<48x32xf32>, vector<32x32xf32> -> vector<32x32xf32>
    %c280 = arith.constant 280 : index
    %c0_41 = arith.constant 0 : index
    %54 = vector.load %arg1[%c280, %c0_41] : memref<312x128xf32, #tpu.memory_space<vmem>>, vector<32x16xf32>
    %cst_42 = arith.constant dense<0.000000e+00> : vector<32x16xf32>
    %55 = tpu.matmul %53, %54, %cst_42 {dimension_numbers = #tpu.dot_dimension_numbers<[1], [0], [0], [1], [0, 0, 1, 1], [], []>} : vector<32x32xf32>, vector<32x16xf32>, vector<32x16xf32> -> vector<32x16xf32>
    %c16_43 = arith.constant 16 : index
    %c127_44 = arith.constant 127 : index
    %56 = vector.load %arg1[%c16_43, %c127_44] : memref<312x128xf32, #tpu.memory_space<vmem>>, vector<32x1xf32>
    %57 = vector.broadcast %56 : vector<32x1xf32> to vector<32x16xf32>
    %58 = arith.addf %55, %57 : vector<32x16xf32>
    %cst_45 = arith.constant 0.000000e+00 : f32
    %59 = vector.broadcast %cst_45 : f32 to vector<32x16xf32>
    %60 = arith.maximumf %58, %59 : vector<32x16xf32>
    %cst_46 = arith.constant 0.000000e+00 : f32
    %61 = vector.broadcast %cst_46 : f32 to vector<96x2xf32>
    %c0_47 = arith.constant 0 : index
    %c8_48 = arith.constant 8 : index
    %62 = vector.load %arg3[%c0_47, %c8_48] : memref<96x128xf32, #tpu.memory_space<vmem>>, vector<96x2xf32>
    tpu.vector_store %arg3[%c0_47, %c8_48], %61 {strides = array<i32>} : memref<96x128xf32, #tpu.memory_space<vmem>>, vector<96x2xf32>,
    %c0_49 = arith.constant 0 : index
    %c10 = arith.constant 10 : index
    %63 = vector.load %arg3[%c0_49, %c10] : memref<96x128xf32, #tpu.memory_space<vmem>>, vector<32x16xf32>
    tpu.vector_store %arg3[%c0_49, %c10], %60 {strides = array<i32>} : memref<96x128xf32, #tpu.memory_space<vmem>>, vector<32x16xf32>,
    %c32_50 = arith.constant 32 : index
    %c9_51 = arith.constant 9 : index
    %64 = vector.load %arg3[%c32_50, %c9_51] : memref<96x128xf32, #tpu.memory_space<vmem>>, vector<32x16xf32>
    tpu.vector_store %arg3[%c32_50, %c9_51], %60 {strides = array<i32>} : memref<96x128xf32, #tpu.memory_space<vmem>>, vector<32x16xf32>,
    %c64 = arith.constant 64 : index
    %c8_52 = arith.constant 8 : index
    %65 = vector.load %arg3[%c64, %c8_52] : memref<96x128xf32, #tpu.memory_space<vmem>>, vector<32x16xf32>
    tpu.vector_store %arg3[%c64, %c8_52], %60 {strides = array<i32>} : memref<96x128xf32, #tpu.memory_space<vmem>>, vector<32x16xf32>,
    %c0_53 = arith.constant 0 : index
    %c8_54 = arith.constant 8 : index
    %66 = vector.load %arg3[%c0_53, %c8_54] : memref<96x128xf32, #tpu.memory_space<vmem>>, vector<96x16xf32>
    %c48 = arith.constant 48 : index
    %c0_55 = arith.constant 0 : index
    %67 = vector.load %arg1[%c48, %c0_55] : memref<312x128xf32, #tpu.memory_space<vmem>>, vector<32x96xf32>
    %cst_56 = arith.constant dense<0.000000e+00> : vector<32x16xf32>
    %68 = tpu.matmul %67, %66, %cst_56 {dimension_numbers = #tpu.dot_dimension_numbers<[1], [0], [0], [1], [0, 0, 1, 1], [], []>} : vector<32x96xf32>, vector<96x16xf32>, vector<32x16xf32> -> vector<32x16xf32>
    %c48_57 = arith.constant 48 : index
    %c127_58 = arith.constant 127 : index
    %69 = vector.load %arg1[%c48_57, %c127_58] : memref<312x128xf32, #tpu.memory_space<vmem>>, vector<32x1xf32>
    %70 = vector.broadcast %69 : vector<32x1xf32> to vector<32x16xf32>
    %71 = arith.addf %68, %70 : vector<32x16xf32>
    %cst_59 = arith.constant 0.000000e+00 : f32
    %72 = vector.broadcast %cst_59 : f32 to vector<32x16xf32>
    %73 = arith.maximumf %71, %72 : vector<32x16xf32>
    %cst_60 = arith.constant 0.000000e+00 : f32
    %74 = vector.broadcast %cst_60 : f32 to vector<96x2xf32>
    %c0_61 = arith.constant 0 : index
    %c8_62 = arith.constant 8 : index
    %75 = vector.load %arg3[%c0_61, %c8_62] : memref<96x128xf32, #tpu.memory_space<vmem>>, vector<96x2xf32>
    tpu.vector_store %arg3[%c0_61, %c8_62], %74 {strides = array<i32>} : memref<96x128xf32, #tpu.memory_space<vmem>>, vector<96x2xf32>,
    %c0_63 = arith.constant 0 : index
    %c10_64 = arith.constant 10 : index
    %76 = vector.load %arg3[%c0_63, %c10_64] : memref<96x128xf32, #tpu.memory_space<vmem>>, vector<32x16xf32>
    tpu.vector_store %arg3[%c0_63, %c10_64], %73 {strides = array<i32>} : memref<96x128xf32, #tpu.memory_space<vmem>>, vector<32x16xf32>,
    %c32_65 = arith.constant 32 : index
    %c9_66 = arith.constant 9 : index
    %77 = vector.load %arg3[%c32_65, %c9_66] : memref<96x128xf32, #tpu.memory_space<vmem>>, vector<32x16xf32>
    tpu.vector_store %arg3[%c32_65, %c9_66], %73 {strides = array<i32>} : memref<96x128xf32, #tpu.memory_space<vmem>>, vector<32x16xf32>,
    %c64_67 = arith.constant 64 : index
    %c8_68 = arith.constant 8 : index
    %78 = vector.load %arg3[%c64_67, %c8_68] : memref<96x128xf32, #tpu.memory_space<vmem>>, vector<32x16xf32>
    tpu.vector_store %arg3[%c64_67, %c8_68], %73 {strides = array<i32>} : memref<96x128xf32, #tpu.memory_space<vmem>>, vector<32x16xf32>,
    %c0_69 = arith.constant 0 : index
    %c8_70 = arith.constant 8 : index
    %79 = vector.load %arg3[%c0_69, %c8_70] : memref<96x128xf32, #tpu.memory_space<vmem>>, vector<96x16xf32>
    %c80 = arith.constant 80 : index
    %c0_71 = arith.constant 0 : index
    %80 = vector.load %arg1[%c80, %c0_71] : memref<312x128xf32, #tpu.memory_space<vmem>>, vector<32x96xf32>
    %cst_72 = arith.constant dense<0.000000e+00> : vector<32x16xf32>
    %81 = tpu.matmul %80, %79, %cst_72 {dimension_numbers = #tpu.dot_dimension_numbers<[1], [0], [0], [1], [0, 0, 1, 1], [], []>} : vector<32x96xf32>, vector<96x16xf32>, vector<32x16xf32> -> vector<32x16xf32>
    %c80_73 = arith.constant 80 : index
    %c127_74 = arith.constant 127 : index
    %82 = vector.load %arg1[%c80_73, %c127_74] : memref<312x128xf32, #tpu.memory_space<vmem>>, vector<32x1xf32>
    %83 = vector.broadcast %82 : vector<32x1xf32> to vector<32x16xf32>
    %84 = arith.addf %81, %83 : vector<32x16xf32>
    %85 = arith.addf %60, %84 : vector<32x16xf32>
    %cst_75 = arith.constant 0.000000e+00 : f32
    %86 = vector.broadcast %cst_75 : f32 to vector<32x16xf32>
    %87 = arith.maximumf %85, %86 : vector<32x16xf32>
    %cst_76 = arith.constant 0.000000e+00 : f32
    %88 = vector.broadcast %cst_76 : f32 to vector<96x4xf32>
    %c0_77 = arith.constant 0 : index
    %c8_78 = arith.constant 8 : index
    %89 = vector.load %arg3[%c0_77, %c8_78] : memref<96x128xf32, #tpu.memory_space<vmem>>, vector<96x4xf32>
    tpu.vector_store %arg3[%c0_77, %c8_78], %88 {strides = array<i32>} : memref<96x128xf32, #tpu.memory_space<vmem>>, vector<96x4xf32>,
    %c0_79 = arith.constant 0 : index
    %c12 = arith.constant 12 : index
    %90 = vector.load %arg3[%c0_79, %c12] : memref<96x128xf32, #tpu.memory_space<vmem>>, vector<32x16xf32>
    tpu.vector_store %arg3[%c0_79, %c12], %87 {strides = array<i32>} : memref<96x128xf32, #tpu.memory_space<vmem>>, vector<32x16xf32>,
    %c32_80 = arith.constant 32 : index
    %c10_81 = arith.constant 10 : index
    %91 = vector.load %arg3[%c32_80, %c10_81] : memref<96x128xf32, #tpu.memory_space<vmem>>, vector<32x16xf32>
    tpu.vector_store %arg3[%c32_80, %c10_81], %87 {strides = array<i32>} : memref<96x128xf32, #tpu.memory_space<vmem>>, vector<32x16xf32>,
    %c64_82 = arith.constant 64 : index
    %c8_83 = arith.constant 8 : index
    %92 = vector.load %arg3[%c64_82, %c8_83] : memref<96x128xf32, #tpu.memory_space<vmem>>, vector<32x16xf32>
    tpu.vector_store %arg3[%c64_82, %c8_83], %87 {strides = array<i32>} : memref<96x128xf32, #tpu.memory_space<vmem>>, vector<32x16xf32>,
    %c0_84 = arith.constant 0 : index
    %c8_85 = arith.constant 8 : index
    %93 = vector.load %arg3[%c0_84, %c8_85] : memref<96x128xf32, #tpu.memory_space<vmem>>, vector<96x16xf32>
    %c112 = arith.constant 112 : index
    %c0_86 = arith.constant 0 : index
    %94 = vector.load %arg1[%c112, %c0_86] : memref<312x128xf32, #tpu.memory_space<vmem>>, vector<32x96xf32>
    %cst_87 = arith.constant dense<0.000000e+00> : vector<32x16xf32>
    %95 = tpu.matmul %94, %93, %cst_87 {dimension_numbers = #tpu.dot_dimension_numbers<[1], [0], [0], [1], [0, 0, 1, 1], [], []>} : vector<32x96xf32>, vector<96x16xf32>, vector<32x16xf32> -> vector<32x16xf32>
    %c112_88 = arith.constant 112 : index
    %c127_89 = arith.constant 127 : index
    %96 = vector.load %arg1[%c112_88, %c127_89] : memref<312x128xf32, #tpu.memory_space<vmem>>, vector<32x1xf32>
    %97 = vector.broadcast %96 : vector<32x1xf32> to vector<32x16xf32>
    %98 = arith.addf %95, %97 : vector<32x16xf32>
    %cst_90 = arith.constant 0.000000e+00 : f32
    %99 = vector.broadcast %cst_90 : f32 to vector<32x16xf32>
    %100 = arith.maximumf %98, %99 : vector<32x16xf32>
    %cst_91 = arith.constant 0.000000e+00 : f32
    %101 = vector.broadcast %cst_91 : f32 to vector<96x4xf32>
    %c0_92 = arith.constant 0 : index
    %c8_93 = arith.constant 8 : index
    %102 = vector.load %arg3[%c0_92, %c8_93] : memref<96x128xf32, #tpu.memory_space<vmem>>, vector<96x4xf32>
    tpu.vector_store %arg3[%c0_92, %c8_93], %101 {strides = array<i32>} : memref<96x128xf32, #tpu.memory_space<vmem>>, vector<96x4xf32>,
    %c0_94 = arith.constant 0 : index
    %c12_95 = arith.constant 12 : index
    %103 = vector.load %arg3[%c0_94, %c12_95] : memref<96x128xf32, #tpu.memory_space<vmem>>, vector<32x16xf32>
    tpu.vector_store %arg3[%c0_94, %c12_95], %100 {strides = array<i32>} : memref<96x128xf32, #tpu.memory_space<vmem>>, vector<32x16xf32>,
    %c32_96 = arith.constant 32 : index
    %c10_97 = arith.constant 10 : index
    %104 = vector.load %arg3[%c32_96, %c10_97] : memref<96x128xf32, #tpu.memory_space<vmem>>, vector<32x16xf32>
    tpu.vector_store %arg3[%c32_96, %c10_97], %100 {strides = array<i32>} : memref<96x128xf32, #tpu.memory_space<vmem>>, vector<32x16xf32>,
    %c64_98 = arith.constant 64 : index
    %c8_99 = arith.constant 8 : index
    %105 = vector.load %arg3[%c64_98, %c8_99] : memref<96x128xf32, #tpu.memory_space<vmem>>, vector<32x16xf32>
    tpu.vector_store %arg3[%c64_98, %c8_99], %100 {strides = array<i32>} : memref<96x128xf32, #tpu.memory_space<vmem>>, vector<32x16xf32>,
    %c0_100 = arith.constant 0 : index
    %c8_101 = arith.constant 8 : index
    %106 = vector.load %arg3[%c0_100, %c8_101] : memref<96x128xf32, #tpu.memory_space<vmem>>, vector<96x16xf32>
    %c144 = arith.constant 144 : index
    %c0_102 = arith.constant 0 : index
    %107 = vector.load %arg1[%c144, %c0_102] : memref<312x128xf32, #tpu.memory_space<vmem>>, vector<32x96xf32>
    %cst_103 = arith.constant dense<0.000000e+00> : vector<32x16xf32>
    %108 = tpu.matmul %107, %106, %cst_103 {dimension_numbers = #tpu.dot_dimension_numbers<[1], [0], [0], [1], [0, 0, 1, 1], [], []>} : vector<32x96xf32>, vector<96x16xf32>, vector<32x16xf32> -> vector<32x16xf32>
    %c144_104 = arith.constant 144 : index
    %c127_105 = arith.constant 127 : index
    %109 = vector.load %arg1[%c144_104, %c127_105] : memref<312x128xf32, #tpu.memory_space<vmem>>, vector<32x1xf32>
    %110 = vector.broadcast %109 : vector<32x1xf32> to vector<32x16xf32>
    %111 = arith.addf %108, %110 : vector<32x16xf32>
    %112 = arith.addf %87, %111 : vector<32x16xf32>
    %cst_106 = arith.constant 0.000000e+00 : f32
    %113 = vector.broadcast %cst_106 : f32 to vector<32x16xf32>
    %114 = arith.maximumf %112, %113 : vector<32x16xf32>
    %cst_107 = arith.constant 0.000000e+00 : f32
    %115 = vector.broadcast %cst_107 : f32 to vector<96x1xf32>
    %c0_108 = arith.constant 0 : index
    %c8_109 = arith.constant 8 : index
    %116 = vector.load %arg3[%c0_108, %c8_109] : memref<96x128xf32, #tpu.memory_space<vmem>>, vector<96x1xf32>
    tpu.vector_store %arg3[%c0_108, %c8_109], %115 {strides = array<i32>} : memref<96x128xf32, #tpu.memory_space<vmem>>, vector<96x1xf32>,
    %cst_110 = arith.constant 0.000000e+00 : f32
    %117 = vector.broadcast %cst_110 : f32 to vector<96x1xf32>
    %c0_111 = arith.constant 0 : index
    %c23 = arith.constant 23 : index
    %118 = vector.load %arg3[%c0_111, %c23] : memref<96x128xf32, #tpu.memory_space<vmem>>, vector<96x1xf32>
    tpu.vector_store %arg3[%c0_111, %c23], %117 {strides = array<i32>} : memref<96x128xf32, #tpu.memory_space<vmem>>, vector<96x1xf32>,
    %c0_112 = arith.constant 0 : index
    %c9_113 = arith.constant 9 : index
    %119 = vector.load %arg3[%c0_112, %c9_113] : memref<96x128xf32, #tpu.memory_space<vmem>>, vector<32x16xf32>
    tpu.vector_store %arg3[%c0_112, %c9_113], %114 {strides = array<i32>} : memref<96x128xf32, #tpu.memory_space<vmem>>, vector<32x16xf32>,
    %c32_114 = arith.constant 32 : index
    %c8_115 = arith.constant 8 : index
    %120 = vector.load %arg3[%c32_114, %c8_115] : memref<96x128xf32, #tpu.memory_space<vmem>>, vector<32x16xf32>
    tpu.vector_store %arg3[%c32_114, %c8_115], %114 {strides = array<i32>} : memref<96x128xf32, #tpu.memory_space<vmem>>, vector<32x16xf32>,
    %c64_116 = arith.constant 64 : index
    %c7_117 = arith.constant 7 : index
    %121 = vector.load %arg3[%c64_116, %c7_117] : memref<96x128xf32, #tpu.memory_space<vmem>>, vector<32x16xf32>
    tpu.vector_store %arg3[%c64_116, %c7_117], %114 {strides = array<i32>} : memref<96x128xf32, #tpu.memory_space<vmem>>, vector<32x16xf32>,
    %c0_118 = arith.constant 0 : index
    %c8_119 = arith.constant 8 : index
    %122 = vector.load %arg3[%c0_118, %c8_119] : memref<96x128xf32, #tpu.memory_space<vmem>>, vector<96x16xf32>
    %c176 = arith.constant 176 : index
    %c0_120 = arith.constant 0 : index
    %123 = vector.load %arg1[%c176, %c0_120] : memref<312x128xf32, #tpu.memory_space<vmem>>, vector<16x96xf32>
    %cst_121 = arith.constant dense<0.000000e+00> : vector<16x16xf32>
    %124 = tpu.matmul %123, %122, %cst_121 {dimension_numbers = #tpu.dot_dimension_numbers<[1], [0], [0], [1], [0, 0, 1, 1], [], []>} : vector<16x96xf32>, vector<96x16xf32>, vector<16x16xf32> -> vector<16x16xf32>
    %c176_122 = arith.constant 176 : index
    %c127_123 = arith.constant 127 : index
    %125 = vector.load %arg1[%c176_122, %c127_123] : memref<312x128xf32, #tpu.memory_space<vmem>>, vector<16x1xf32>
    %126 = vector.broadcast %125 : vector<16x1xf32> to vector<16x16xf32>
    %127 = arith.addf %124, %126 : vector<16x16xf32>
    %cst_124 = arith.constant 0.000000e+00 : f32
    %128 = vector.broadcast %cst_124 : f32 to vector<16x16xf32>
    %129 = arith.maximumf %127, %128 : vector<16x16xf32>
    %c192 = arith.constant 192 : index
    %c0_125 = arith.constant 0 : index
    %130 = vector.load %arg1[%c192, %c0_125] : memref<312x128xf32, #tpu.memory_space<vmem>>, vector<2x16xf32>
    %cst_126 = arith.constant dense<0.000000e+00> : vector<2x16xf32>
    %131 = tpu.matmul %130, %129, %cst_126 {dimension_numbers = #tpu.dot_dimension_numbers<[1], [0], [0], [1], [0, 0, 1, 1], [], []>} : vector<2x16xf32>, vector<16x16xf32>, vector<2x16xf32> -> vector<2x16xf32>
    %c192_127 = arith.constant 192 : index
    %c127_128 = arith.constant 127 : index
    %132 = vector.load %arg1[%c192_127, %c127_128] : memref<312x128xf32, #tpu.memory_space<vmem>>, vector<2x1xf32>
    %133 = vector.broadcast %132 : vector<2x1xf32> to vector<2x16xf32>
    %134 = arith.addf %131, %133 : vector<2x16xf32>
    %135 = arith.negf %134 : vector<2x16xf32>
    %136 = math.exp %135 : vector<2x16xf32>
    %cst_129 = arith.constant 1.000000e+00 : f32
    %137 = vector.broadcast %cst_129 : f32 to vector<2x16xf32>
    %138 = arith.addf %137, %136 : vector<2x16xf32>
    %139 = arith.divf %137, %138 : vector<2x16xf32>
    %cst_130 = arith.constant dense<0.000000e+00> : vector<2xf32>
    %140 = vector.multi_reduction <add>, %139, %cst_130 [1] : vector<2x16xf32> to vector<2xf32>
    %141 = vector.shape_cast %140 : vector<2xf32> to vector<2x1xf32>
    %cst_131 = arith.constant 1.600000e+01 : f32
    %142 = vector.broadcast %cst_131 : f32 to vector<2x1xf32>
    %143 = arith.divf %141, %142 : vector<2x1xf32>
    %cst_132 = arith.constant dense<0xFF800000> : vector<2xf32>
    %144 = vector.multi_reduction <maximumf>, %139, %cst_132 [1] : vector<2x16xf32> to vector<2xf32>
    %145 = vector.shape_cast %144 : vector<2xf32> to vector<2x1xf32>
    %146 = arith.mulf %139, %139 : vector<2x16xf32>
    %cst_133 = arith.constant dense<0.000000e+00> : vector<2xf32>
    %147 = vector.multi_reduction <add>, %146, %cst_133 [1] : vector<2x16xf32> to vector<2xf32>
    %148 = vector.shape_cast %147 : vector<2xf32> to vector<2x1xf32>
    %cst_134 = arith.constant 1.600000e+01 : f32
    %149 = vector.broadcast %cst_134 : f32 to vector<2x1xf32>
    %150 = arith.divf %148, %149 : vector<2x1xf32>
    %c208 = arith.constant 208 : index
    %c0_135 = arith.constant 0 : index
    %151 = vector.load %arg1[%c208, %c0_135] : memref<312x128xf32, #tpu.memory_space<vmem>>, vector<3x3xf32>
    %c211 = arith.constant 211 : index
    %c0_136 = arith.constant 0 : index
    %152 = vector.load %arg1[%c211, %c0_136] : memref<312x128xf32, #tpu.memory_space<vmem>>, vector<1x3xf32>
    %153 = vector.extract_strided_slice %151 {offsets = [0, 0], sizes = [1, 3], strides = [1, 1]} : vector<3x3xf32> to vector<1x3xf32>
    %154 = vector.broadcast %143 : vector<2x1xf32> to vector<2x3xf32>
    %155 = vector.broadcast %153 : vector<1x3xf32> to vector<2x3xf32>
    %156 = arith.mulf %154, %155 : vector<2x3xf32>
    %157 = vector.extract_strided_slice %151 {offsets = [1, 0], sizes = [1, 3], strides = [1, 1]} : vector<3x3xf32> to vector<1x3xf32>
    %158 = vector.broadcast %145 : vector<2x1xf32> to vector<2x3xf32>
    %159 = vector.broadcast %157 : vector<1x3xf32> to vector<2x3xf32>
    %160 = arith.mulf %158, %159 : vector<2x3xf32>
    %161 = arith.addf %156, %160 : vector<2x3xf32>
    %162 = vector.extract_strided_slice %151 {offsets = [2, 0], sizes = [1, 3], strides = [1, 1]} : vector<3x3xf32> to vector<1x3xf32>
    %163 = vector.broadcast %150 : vector<2x1xf32> to vector<2x3xf32>
    %164 = vector.broadcast %162 : vector<1x3xf32> to vector<2x3xf32>
    %165 = arith.mulf %163, %164 : vector<2x3xf32>
    %166 = arith.addf %161, %165 : vector<2x3xf32>
    %167 = vector.broadcast %152 : vector<1x3xf32> to vector<2x3xf32>
    %168 = arith.addf %166, %167 : vector<2x3xf32>
    %cst_137 = arith.constant 0.000000e+00 : f32
    %169 = vector.broadcast %cst_137 : f32 to vector<2x128xf32>
    %c0_138 = arith.constant 0 : index
    %c0_139 = arith.constant 0 : index
    %170 = vector.load %arg2[%c0_138, %c0_139] : memref<2x128xf32, #tpu.memory_space<vmem>>, vector<2x128xf32>
    tpu.vector_store %arg2[%c0_138, %c0_139], %169 {strides = array<i32>} : memref<2x128xf32, #tpu.memory_space<vmem>>, vector<2x128xf32>,
    %c0_140 = arith.constant 0 : index
    %c0_141 = arith.constant 0 : index
    %171 = vector.load %arg2[%c0_140, %c0_141] : memref<2x128xf32, #tpu.memory_space<vmem>>, vector<2x16xf32>
    tpu.vector_store %arg2[%c0_140, %c0_141], %139 {strides = array<i32>} : memref<2x128xf32, #tpu.memory_space<vmem>>, vector<2x16xf32>,
    %c0_142 = arith.constant 0 : index
    %c16_143 = arith.constant 16 : index
    %172 = vector.load %arg2[%c0_142, %c16_143] : memref<2x128xf32, #tpu.memory_space<vmem>>, vector<2x3xf32>
    tpu.vector_store %arg2[%c0_142, %c16_143], %168 {strides = array<i32>} : memref<2x128xf32, #tpu.memory_space<vmem>>, vector<2x3xf32>,
    return
  }
}

</mosaic_0001>

<bundles_post_ra>
// kernel: pulsar_net_forward.1
= control target key start
LH: loop header
LB: loop body
LE: loop exit
PB: predicated region body
PF: predicated region fallthrough
CT: control target
= control target key end

     0   :  { %7 = vsyncpa [#allocation4], 0  ;;  %s2936_s0 = inlined_call_operand.hbm [shape: f32[8,64], index: 0, kind: input, shape index: {}]   ;;  %s2937_s1 = inlined_call_operand.hbm [shape: f32[312,128], index: 1, kind: input, shape index: {}]   ;;  %s2938_s2 = inlined_call_operand.vmem [shape: f32[2,128], index: 2, kind: output, shape index: {}]  }
   0x1   :  { %8 = vsyncpa [#allocation6], 0  ;;  %s2447_s9 = smov [#allocation3]   ;;  %s2448_s11 = smov [#allocation5]  }
   0x2   :  { %s15_s10 = sshll.u32 %s2447_s9, 4  ;;  %s24_s12 = sshll.u32 %s2448_s11, 4  ;;  %s16_s10 = int_to_ptr.vmem [resolvable:$true] %s15_s10  ;;  %s25_s12 = int_to_ptr.vmem [resolvable:$true] %s24_s12 }
   0x3   :  { %s2411_s13 = scalar_lea.vmem %s16_s10, 128  ;;  %p2416_p1 = scmp.lt.s32.totalorder %s16_s10, %s16_s10 }
   0x4   :  { %p2412_p0 = scmp.ne.s32.totalorder %s16_s10, %s2411_s13  ;;  %p2417_p2 = scmp.lt.s32.totalorder %s2411_s13, %s2411_s13 }
   0x6   :  { %p2418_p3 = por %p2417_p2, %p2416_p1 }
   0x8   :  { %p2419_p4 = pnand %p2418_p3, %p2412_p0 }
   0xa   :  { %2422 = shalt.err (!%p2419_p4)
}
   0xb   :  { %18 = dma.hbm_to_vmem [thread:$0]  %s2936_s0, 128, %s16_s10, [#allocation4]  }
   0xc   :  { %s2431_s16 = scalar_lea.vmem %s25_s12, 4992  ;;  %p2436_p6 = scmp.lt.s32.totalorder %s25_s12, %s25_s12 }
   0xd   :  { %p2432_p5 = scmp.ne.s32.totalorder %s25_s12, %s2431_s16  ;;  %p2437_p7 = scmp.lt.s32.totalorder %s2431_s16, %s2431_s16 }
   0xf   :  { %p2438_p8 = por %p2437_p7, %p2436_p6 }
  0x11   :  { %p2439_p9 = pnand %p2438_p8, %p2432_p5 }
  0x13   :  { %2442 = shalt.err (!%p2439_p9)
}
  0x14   :  { %s2449_s17 = smov 128   ;;  %s2450_s18 = smov 8  }
  0x15   :  { %30 = dma.hbm_to_vmem [thread:$0]  %s2937_s1, 4992, %s25_s12, [#allocation6], %s2449_s17, %s2449_s17, %s2450_s18  }
  0x16   :  { %2443 = dma.done.wait [#allocation4], 128  }
  0x17   :  { %2444 = vsyncadd [#allocation4], 4294967168 }
  0x18   :  { %2445 = dma.done.wait [#allocation6], 4992  }
  0x19   :  { %2446 = vsyncadd [#allocation6], 4294962304  ;;  %vm38_vm0 = vcmask 523264   ;;  %v37_v0 = vld [vmem:[#allocation3] sm:$0xff]  ;;  %v2451_v7 = vmov 0.0   ;;  %vm2452_vm1 = vmmov 0  }
  0x1a   :  { %v39_v1 = vsel %vm38_vm0, %v37_v0, 0.0  ;;  %2163 = vmatprep.subr.mxu1 %v2451_v7  ;;  %1998 = vst [vmem:[%s2938_s2] sm:$0x3] %v2451_v7  ;;  %2165 = vmatprep.mubr.msk.f32.mxu1 %vm2452_vm1, %v2451_v7  ;;  %v54_v13 = vld [vmem:[#allocation5 + $0xc8] sm:$0xff]  ;;  %vm55_vm2 = vcmask 64512   ;;  %vm131_vm3 = vcmask 72768   ;;  %vm135_vm4 = vcmask 589368  }
  0x1b   :  { %40 = vadd.xlane.f32.xlu0 %v39_v1  ;;  %132 = vst.msk [vmem:[#allocation2] sm:$0xff] %vm131_vm3, %v2451_v7  ;;  %133 = vst.msk [vmem:[#allocation2 + $0x8] sm:$0xff] %vm131_vm3, %v2451_v7  ;;  %s2453_s21 = smov 9   ;;  %s2454_s22 = smov 7   ;;  %vm143_vm5 = vcmask 597064   ;;  %vm153_vm6 = vcmask 580664  }
  0x1c   :  { %134 = vst.msk [vmem:[#allocation2 + $0x10] sm:$0xff] %vm131_vm3, %v2451_v7  ;;  %356 = vst.msk [vmem:[#allocation2 + $0x18] sm:$0xff] %vm131_vm3, %v2451_v7  ;;  %vm148_vm7 = vcmask 588864   ;;  %v158_v20 = vld [vmem:[#allocation5] sm:$0xff]  ;;  %vm172_vm8 = vcmask 195584   ;;  %s2455_s23 = smov 120  }
  0x1d   :  { %357 = vst.msk [vmem:[#allocation2 + $0x20] sm:$0xff] %vm131_vm3, %v2451_v7  ;;  %358 = vst.msk [vmem:[#allocation2 + $0x28] sm:$0xff] %vm131_vm3, %v2451_v7  ;;  %2174 = vmatprep.mubr.msk.f32.mxu0 %vm172_vm8, %v158_v20  ;;  %v159_v27 = vld [vmem:[#allocation5 + $0x8] sm:$0xff]  ;;  %v261_v28 = vld [vmem:[#allocation5 + $0x110] sm:$0xff]  ;;  %v2456_v36 = vmov 127   ;;  %vm359_vm9 = vcmask 326968  }
  0x1e   :  { %136 = vst.msk [vmem:[#allocation2] sm:$0xff] %vm135_vm4, %v2451_v7  ;;  %138 = vst.msk [vmem:[#allocation2 + $0x10] sm:$0xff] %vm135_vm4, %v2451_v7  ;;  %v260_v29 = vld [vmem:[#allocation5 + $0x108] sm:$0xff]  ;;  %v259_v30 = vld [vmem:[#allocation5 + $0x100] sm:$0xff]  ;;  %2395 = vset.pattern.permute.xlu1 %v2456_v36  ;;  %2396 = vset.pattern.permute.xlu0 %v2456_v36  ;;  %vm392_vm10 = vcmask 318520   ;;  %vm383_vm11 = vcmask 326720  }
  0x1f   :  { %137 = vst.msk [vmem:[#allocation2 + $0x8] sm:$0xff] %vm135_vm4, %v2451_v7  ;;  %v258_v31 = vld [vmem:[#allocation5 + $0xf8] sm:$0xff]  ;;  %v257_v32 = vld [vmem:[#allocation5 + $0xf0] sm:$0xff]  ;;  %v256_v33 = vld [vmem:[#allocation5 + $0xe8] sm:$0xff]  ;;  %vm374_vm12 = vcmask 334920   ;;  %vm429_vm13 = vcmask 392192  }
  0x20   :  { %v255_v34 = vld [vmem:[#allocation5 + $0xe0] sm:$0xff]  ;;  %v254_v35 = vld [vmem:[#allocation5 + $0xd8] sm:$0xff]  ;;  %365 = vst.msk [vmem:[#allocation2 + $0x28] sm:$0xff] %vm359_vm9, %v2451_v7  ;;  %363 = vst.msk [vmem:[#allocation2 + $0x18] sm:$0xff] %vm359_vm9, %v2451_v7  ;;  %vm547_vm14 = vcmask 261120   ;;  %vm649_vm15 = vcmask 80960  }
  0x21   :  { %364 = vst.msk [vmem:[#allocation2 + $0x20] sm:$0xff] %vm359_vm9, %v2451_v7  ;;  %v401_v51 = vld [vmem:[#allocation5 + $0x10] sm:$0xff]  ;;  %v404_v60 = vld [vmem:[#allocation5 + $0x28] sm:$0xff]  ;;  %v402_v61 = vld [vmem:[#allocation5 + $0x18] sm:$0xff]  ;;  %s2457_s24 = smov 10   ;;  %vm678_vm4 = vcmask 212048  }
  0x22   :  { %v403_v62 = vld [vmem:[#allocation5 + $0x20] sm:$0xff]  ;;  %v530_v63 = vld [vmem:[#allocation5 + $0x130] sm:$0xff]  ;;  %661 = vst.msk [vmem:[#allocation2 + $0x58] sm:$0xff] %vm649_vm15, %v2451_v7  ;;  %656 = vst.msk [vmem:[#allocation2 + $0x30] sm:$0xff] %vm649_vm15, %v2451_v7  ;;  %s2458_s25 = smov 12   ;;  %s2459_s28 = smov 16  }
  0x23   :  { %657 = vst.msk [vmem:[#allocation2 + $0x38] sm:$0xff] %vm649_vm15, %v2451_v7  ;;  %658 = vst.msk [vmem:[#allocation2 + $0x40] sm:$0xff] %vm649_vm15, %v2451_v7 }
  0x24   :  { %659 = vst.msk [vmem:[#allocation2 + $0x48] sm:$0xff] %vm649_vm15, %v2451_v7  ;;  %660 = vst.msk [vmem:[#allocation2 + $0x50] sm:$0xff] %vm649_vm15, %v2451_v7 }
  0xa4   :  { %v41_v2 = vpop.xlane.xlu0 %40 }
  0xa5   :  { %v43_v3 = vmul.f32 0.015625, %v41_v2 }
  0xa7   :  { %v44_v4 = vsub.f32 %v37_v0, %v43_v3  ;;  %v529_v0 = vld [vmem:[#allocation5 + $0x128] sm:$0xff] }
  0xa9   :  { %v45_v5 = vmul.f32 %v44_v4, %v44_v4 }
  0xab   :  { %v46_v6 = vsel %vm38_vm0, %v45_v5, 0.0 }
  0xac   :  { %47 = vadd.xlane.f32.xlu0 %v46_v6 }
 0x135   :  { %v48_v8 = vpop.xlane.xlu0 %47 }
 0x136   :  { %v49_v9 = vmul.f32 0.015625, %v48_v8  ;;  %v528_v8 = vld [vmem:[#allocation5 + $0x120] sm:$0xff] }
 0x138   :  { %v50_v10 = vadd.f32 1e-05, %v49_v9  ;;  %v527_v9 = vld [vmem:[#allocation5 + $0x118] sm:$0xff] }
 0x13a   :  { %2397 = vrsqrt.f32 %v50_v10 }
 0x147   :  { %v2398_v11 = vpop.eup %2397 }
 0x148   :  { %v52_v12 = vmul.f32 %v2398_v11, %v44_v4 }
 0x14a   :  { %2164 = vmatpush3.msra.mxu1 %v52_v12 }
 0x14b   :  { %2166 = vmatmul.mubr.msk.f32.vlgmr.msra.gmra.mxu1 %vm55_vm2, %v54_v13  ;;  %vm695_vm2 = vcmask 203848  }
 0x14c   :  { %2208 = vmatprep.mubr.msk.f32.mxu1 %vm429_vm13, %v401_v51 }
 0x20b   :  { %v125_v14 = vpop.f32.mrf.mxu1 }
 0x20c   :  { %v2013_v15 = vclamps-f32 %v125_v14, 1000.0 }
 0x20d   :  { %v2167_v16 = vpop.f32.mrf.mxu1 }
 0x20e   :  { %140 = vrot.lane.b32.xlu0 %v2013_v15, %s2453_s21  ;;  %150 = vrot.lane.b32.xlu1 %v2013_v15, %s2454_s22 }
 0x212   :  { %145 = vrot.lane.b32.xlu1 %v2013_v15, %s2450_s18 }
 0x280   :  { %v141_v17 = vpop.permute.xlu0 %140  ;;  %v151_v18 = vpop.permute.xlu1 %150 }
 0x281   :  { %144 = vst.msk [vmem:[#allocation2] sm:$0xff] %vm143_vm5, %v141_v17  ;;  %vm801_vm5 = vcmask 785408  }
 0x282   :  { %154 = vst.msk [vmem:[#allocation2 + $0x10] sm:$0xff] %vm153_vm6, %v151_v18  ;;  %vm1148_vm6 = vcmask 97344  }
 0x284   :  { %v146_v19 = vpop.permute.xlu1 %145 }
 0x285   :  { %149 = vst.msk [vmem:[#allocation2 + $0x8] sm:$0xff] %vm148_vm7, %v146_v19  ;;  %vm1177_vm7 = vcmask 228448  }
 0x288   :  { %v155_v22 = vld [vmem:[#allocation2] sm:$0xff] }
 0x289   :  { %v157_v21 = vld [vmem:[#allocation2 + $0x10] sm:$0xff]  ;;  %353 = vst.msk [vmem:[#allocation2] sm:$0xff] %vm131_vm3, %v2451_v7 }
 0x28a   :  { %167 = vrot.lane.b32.xlu1 %v157_v21, %s2455_s23  ;;  %355 = vst.msk [vmem:[#allocation2 + $0x10] sm:$0xff] %vm131_vm3, %v2451_v7 }
 0x28b   :  { %360 = vst.msk [vmem:[#allocation2] sm:$0xff] %vm359_vm9, %v2451_v7  ;;  %362 = vst.msk [vmem:[#allocation2 + $0x10] sm:$0xff] %vm359_vm9, %v2451_v7 }
 0x28c   :  { %v156_v23 = vld [vmem:[#allocation2 + $0x8] sm:$0xff] }
 0x28d   :  { %354 = vst.msk [vmem:[#allocation2 + $0x8] sm:$0xff] %vm131_vm3, %v2451_v7 }
 0x28e   :  { %165 = vrot.lane.b32.xlu1 %v156_v23, %s2455_s23  ;;  %361 = vst.msk [vmem:[#allocation2 + $0x8] sm:$0xff] %vm359_vm9, %v2451_v7  ;;  %vm1960_vm9 = vcmask 123904  }
 0x292   :  { %163 = vrot.lane.b32.xlu1 %v155_v22, %s2455_s23 }
 0x296   :  { %267 = vperm.xlu1 %2395, %v159_v27  }
 0x29a   :  { %263 = vperm.xlu1 %2395, %v158_v20  }
 0x2fc   :  { %v168_v24 = vpop.permute.xlu1 %167 }
 0x2fd   :  { %2168 = vmatprep.subr.mxu0 %v168_v24 }
 0x2fe   :  { %2169 = vmatpush3.msra.mxu0 %v168_v24 }
 0x300   :  { %v166_v25 = vpop.permute.xlu1 %165 }
 0x301   :  { %2170 = vmatprep.subr.mxu0 %v166_v25 }
 0x302   :  { %2171 = vmatpush3.msra.mxu0 %v166_v25 }
 0x304   :  { %v164_v26 = vpop.permute.xlu1 %163 }
 0x305   :  { %2172 = vmatprep.subr.mxu0 %v164_v26 }
 0x306   :  { %2173 = vmatpush3.msra.mxu0 %v164_v26 }
 0x307   :  { %2175 = vmatmul.mubr.msk.f32.vlgmr.msra.gmra.mxu0 %vm172_vm8, %v159_v27  ;;  %2177 = vmatprep.subr.mxu0 %v261_v28  ;;  %vm1881_vm8 = vcmask 130048  }
 0x308   :  { %2178 = vmatpush3.msra.mxu0 %v261_v28 }
 0x309   :  { %2179 = vmatprep.subr.mxu0 %v260_v29 }
 0x30a   :  { %2180 = vmatpush3.msra.mxu0 %v260_v29 }
 0x30b   :  { %2181 = vmatprep.subr.mxu0 %v259_v30 }
 0x30c   :  { %2182 = vmatpush3.msra.mxu0 %v259_v30 }
 0x30d   :  { %2183 = vmatprep.subr.mxu0 %v258_v31 }
 0x30e   :  { %2184 = vmatpush3.msra.mxu0 %v258_v31 }
 0x30f   :  { %2185 = vmatprep.subr.mxu0 %v257_v32 }
 0x310   :  { %2186 = vmatpush3.msra.mxu0 %v257_v32 }
 0x311   :  { %2187 = vmatprep.subr.mxu0 %v256_v33  ;;  %v268_v39 = vpop.permute.xlu1 %267 }
 0x312   :  { %2188 = vmatpush3.msra.mxu0 %v256_v33 }
 0x313   :  { %2189 = vmatprep.subr.mxu0 %v255_v34 }
 0x314   :  { %2190 = vmatpush3.msra.mxu0 %v255_v34 }
 0x315   :  { %2191 = vmatprep.subr.mxu0 %v254_v35  ;;  %v264_v42 = vpop.permute.xlu1 %263 }
 0x316   :  { %2192 = vmatpush3.msra.mxu0 %v254_v35 }
 0x317   :  { %2214 = vmatprep.subr.mxu0 %v530_v63 }
 0x3c7   :  { %v2176_v37 = vpop.f32.mrf.mxu0 }
 0x3c9   :  { %v245_v38 = vpop.f32.mrf.mxu0 }
 0x3ca   :  { %2193 = vmatprep.mubr.msk.f32.mxu0 %vm38_vm0, %v245_v38 }
 0x3cb   :  { %2194 = vmatmul.mubr.msk.f32.vlgmr.msra.gmra.mxu0 %vm38_vm0, %v2176_v37  ;;  %vm712_vm0 = vcmask 195648  }
 0x3cc   :  { %2215 = vmatpush3.msra.mxu0 %v530_v63 }
 0x3cd   :  { %2216 = vmatprep.subr.mxu0 %v529_v0 }
 0x3ce   :  { %2217 = vmatpush3.msra.mxu0 %v529_v0 }
 0x3cf   :  { %2218 = vmatprep.subr.mxu0 %v528_v8 }
 0x3d0   :  { %2219 = vmatpush3.msra.mxu0 %v528_v8 }
 0x3d1   :  { %2220 = vmatprep.subr.mxu0 %v527_v9 }
 0x3d2   :  { %2221 = vmatpush3.msra.mxu0 %v527_v9 }
 0x48b   :  { %v2195_v40 = vpop.f32.mrf.mxu0 }
 0x48c   :  { %v348_v41 = vadd.f32 %v2195_v40, %v268_v39 }
 0x48d   :  { %v342_v43 = vpop.f32.mrf.mxu0 }
 0x48e   :  { %v352_v44 = vmax.f32 %v348_v41, 0.0  ;;  %v343_v45 = vadd.f32 %v342_v43, %v264_v42 }
 0x490   :  { %v351_v46 = vmax.f32 %v343_v45, 0.0  ;;  %388 = vrot.lane.b32.xlu1 %v352_v44, %s2454_s22 }
 0x492   :  { %386 = vrot.lane.b32.xlu0 %v351_v46, %s2454_s22 }
 0x494   :  { %379 = vrot.lane.b32.xlu1 %v352_v44, %s2450_s18 }
 0x496   :  { %377 = vrot.lane.b32.xlu0 %v351_v46, %s2450_s18 }
 0x498   :  { %370 = vrot.lane.b32.xlu1 %v352_v44, %s2453_s21 }
 0x49a   :  { %368 = vrot.lane.b32.xlu0 %v351_v46, %s2453_s21  ;;  %v729_v46 = vld [vmem:[#allocation5 + $0x30] sm:$0xff] }
 0x502   :  { %v389_v47 = vpop.permute.xlu1 %388 }
 0x503   :  { %394 = vst.msk [vmem:[#allocation2 + $0x28] sm:$0xff] %vm392_vm10, %v389_v47 }
 0x504   :  { %v387_v48 = vpop.permute.xlu0 %386 }
 0x505   :  { %393 = vst.msk [vmem:[#allocation2 + $0x20] sm:$0xff] %vm392_vm10, %v387_v48  ;;  %vm2004_vm10 = vcmask 148608  }
 0x506   :  { %v380_v49 = vpop.permute.xlu1 %379 }
 0x507   :  { %385 = vst.msk [vmem:[#allocation2 + $0x18] sm:$0xff] %vm383_vm11, %v380_v49 }
 0x508   :  { %v378_v50 = vpop.permute.xlu0 %377 }
 0x509   :  { %384 = vst.msk [vmem:[#allocation2 + $0x10] sm:$0xff] %vm383_vm11, %v378_v50 }
 0x50a   :  { %v371_v52 = vpop.permute.xlu1 %370  ;;  %v400_v53 = vld [vmem:[#allocation2 + $0x28] sm:$0xff] }
 0x50b   :  { %376 = vst.msk [vmem:[#allocation2 + $0x8] sm:$0xff] %vm374_vm12, %v371_v52  ;;  %421 = vrot.lane.b32.xlu1 %v400_v53, %s2455_s23 }
 0x50c   :  { %v369_v54 = vpop.permute.xlu0 %368  ;;  %v399_v55 = vld [vmem:[#allocation2 + $0x20] sm:$0xff]  ;;  %655 = vst.msk [vmem:[#allocation2 + $0x28] sm:$0xff] %vm649_vm15, %v2451_v7 }
 0x50d   :  { %375 = vst.msk [vmem:[#allocation2] sm:$0xff] %vm374_vm12, %v369_v54  ;;  %419 = vrot.lane.b32.xlu0 %v399_v55, %s2455_s23  ;;  %v732_v55 = vld [vmem:[#allocation5 + $0x48] sm:$0xff] }
 0x50e   :  { %v398_v56 = vld [vmem:[#allocation2 + $0x18] sm:$0xff]  ;;  %654 = vst.msk [vmem:[#allocation2 + $0x20] sm:$0xff] %vm649_vm15, %v2451_v7 }
 0x50f   :  { %417 = vrot.lane.b32.xlu1 %v398_v56, %s2455_s23  ;;  %653 = vst.msk [vmem:[#allocation2 + $0x18] sm:$0xff] %vm649_vm15, %v2451_v7  ;;  %v731_v56 = vld [vmem:[#allocation5 + $0x40] sm:$0xff] }
 0x510   :  { %v397_v57 = vld [vmem:[#allocation2 + $0x10] sm:$0xff] }
 0x511   :  { %415 = vrot.lane.b32.xlu0 %v397_v57, %s2455_s23  ;;  %652 = vst.msk [vmem:[#allocation2 + $0x10] sm:$0xff] %vm649_vm15, %v2451_v7  ;;  %v730_v57 = vld [vmem:[#allocation5 + $0x38] sm:$0xff] }
 0x512   :  { %v396_v58 = vld [vmem:[#allocation2 + $0x8] sm:$0xff] }
 0x513   :  { %413 = vrot.lane.b32.xlu1 %v396_v58, %s2455_s23  ;;  %651 = vst.msk [vmem:[#allocation2 + $0x8] sm:$0xff] %vm649_vm15, %v2451_v7 }
 0x514   :  { %v395_v59 = vld [vmem:[#allocation2] sm:$0xff] }
 0x515   :  { %411 = vrot.lane.b32.xlu0 %v395_v59, %s2455_s23  ;;  %650 = vst.msk [vmem:[#allocation2] sm:$0xff] %vm649_vm15, %v2451_v7 }
 0x517   :  { %544 = vperm.xlu1 %2395, %v404_v60  }
 0x519   :  { %540 = vperm.xlu0 %2396, %v403_v62  }
 0x51b   :  { %536 = vperm.xlu1 %2395, %v402_v61  }
 0x51f   :  { %532 = vperm.xlu1 %2395, %v401_v51  }
 0x57d   :  { %v422_v1 = vpop.permute.xlu1 %421 }
 0x57e   :  { %2196 = vmatprep.subr.mxu1 %v422_v1 }
 0x57f   :  { %v420_v2 = vpop.permute.xlu0 %419  ;;  %2197 = vmatpush3.msra.mxu1 %v422_v1 }
 0x580   :  { %2198 = vmatprep.subr.mxu1 %v420_v2 }
 0x581   :  { %2199 = vmatpush3.msra.mxu1 %v420_v2  ;;  %v418_v3 = vpop.permute.xlu1 %417 }
 0x582   :  { %2200 = vmatprep.subr.mxu1 %v418_v3 }
 0x583   :  { %v416_v4 = vpop.permute.xlu0 %415  ;;  %2201 = vmatpush3.msra.mxu1 %v418_v3 }
 0x584   :  { %2202 = vmatprep.subr.mxu1 %v416_v4 }
 0x585   :  { %2203 = vmatpush3.msra.mxu1 %v416_v4  ;;  %v414_v5 = vpop.permute.xlu1 %413 }
 0x586   :  { %2204 = vmatprep.subr.mxu1 %v414_v5 }
 0x587   :  { %v412_v6 = vpop.permute.xlu0 %411  ;;  %2205 = vmatpush3.msra.mxu1 %v414_v5 }
 0x588   :  { %2206 = vmatprep.subr.mxu1 %v412_v6 }
 0x589   :  { %2207 = vmatpush3.msra.mxu1 %v412_v6 }
 0x58a   :  { %2209 = vmatmul.mubr.msk.f32.vlgmr.msra.gmra.mxu1 %vm429_vm13, %v402_v61 }
 0x58b   :  { %2211 = vmatprep.mubr.msk.f32.mxu1 %vm429_vm13, %v403_v62 }
 0x58e   :  { %2212 = vmatmul.mubr.msk.f32.gmra.mxu1 %vm429_vm13, %v404_v60 }
 0x58f   :  { %2252 = vmatprep.mubr.msk.f32.mxu1 %vm801_vm5, %v729_v46 }
 0x592   :  { %v545_v14 = vpop.permute.xlu1 %544 }
 0x594   :  { %v541_v19 = vpop.permute.xlu0 %540 }
 0x596   :  { %v537_v16 = vpop.permute.xlu1 %536 }
 0x59a   :  { %v533_v25 = vpop.permute.xlu1 %532 }
 0x64a   :  { %v2210_v10 = vpop.f32.mrf.mxu1 }
 0x64c   :  { %v508_v11 = vpop.f32.mrf.mxu1 }
 0x64d   :  { %2222 = vmatprep.mubr.msk.f32.mxu0 %vm547_vm14, %v508_v11 }
 0x64e   :  { %v2213_v12 = vpop.f32.mrf.mxu1  ;;  %2223 = vmatmul.mubr.msk.f32.vlgmr.msra.gmra.mxu0 %vm547_vm14, %v2210_v10 }
 0x650   :  { %v518_v13 = vpop.f32.mrf.mxu1 }
 0x651   :  { %2225 = vmatprep.mubr.msk.f32.mxu0 %vm547_vm14, %v518_v13 }
 0x652   :  { %2226 = vmatmul.mubr.msk.f32.gmra.mxu0 %vm547_vm14, %v2213_v12 }
 0x70e   :  { %v2224_v15 = vpop.f32.mrf.mxu0 }
 0x70f   :  { %v632_v22 = vadd.f32 %v2224_v15, %v537_v16 }
 0x710   :  { %v626_v17 = vpop.f32.mrf.mxu0 }
 0x711   :  { %v627_v26 = vadd.f32 %v626_v17, %v533_v25  ;;  %v2574_v28 = vmax.f32 %v632_v22, 0.0 }
 0x712   :  { %v2227_v18 = vpop.f32.mrf.mxu0 }
 0x713   :  { %v642_v20 = vadd.f32 %v2227_v18, %v545_v14  ;;  %v2578_v29 = vmax.f32 %v627_v26, 0.0 }
 0x714   :  { %v636_v21 = vpop.f32.mrf.mxu0 }
 0x715   :  { %v2568_v23 = vmax.f32 %v642_v20, 0.0  ;;  %v637_v24 = vadd.f32 %v636_v21, %v541_v19 }
 0x717   :  { %v2570_v27 = vmax.f32 %v637_v24, 0.0  ;;  %706 = vrot.lane.b32.xlu0 %v2568_v23, %s2450_s18  ;;  %v975_v24 = vld [vmem:[#allocation5 + $0x50] sm:$0xff] }
 0x718   :  { %2282 = vmatprep.mubr.msk.f32.mxu0 %vm801_vm5, %v975_v24 }
 0x719   :  { %704 = vrot.lane.b32.xlu1 %v2570_v27, %s2450_s18 }
 0x71b   :  { %702 = vrot.lane.b32.xlu0 %v2574_v28, %s2450_s18 }
 0x71d   :  { %700 = vrot.lane.b32.xlu1 %v2578_v29, %s2450_s18 }
 0x71f   :  { %689 = vrot.lane.b32.xlu0 %v2568_v23, %s2453_s21 }
 0x721   :  { %687 = vrot.lane.b32.xlu1 %v2570_v27, %s2453_s21 }
 0x723   :  { %685 = vrot.lane.b32.xlu0 %v2574_v28, %s2453_s21 }
 0x725   :  { %683 = vrot.lane.b32.xlu1 %v2578_v29, %s2453_s21 }
 0x727   :  { %672 = vrot.lane.b32.xlu0 %v2568_v23, %s2457_s24 }
 0x729   :  { %670 = vrot.lane.b32.xlu1 %v2570_v27, %s2457_s24 }
 0x72b   :  { %668 = vrot.lane.b32.xlu0 %v2574_v28, %s2457_s24 }
 0x72d   :  { %666 = vrot.lane.b32.xlu1 %v2578_v29, %s2457_s24 }
 0x789   :  { %v707_v30 = vpop.permute.xlu0 %706 }
 0x78a   :  { %716 = vst.msk [vmem:[#allocation2 + $0x58] sm:$0xff] %vm712_vm0, %v707_v30 }
 0x78b   :  { %v705_v31 = vpop.permute.xlu1 %704 }
 0x78c   :  { %715 = vst.msk [vmem:[#allocation2 + $0x50] sm:$0xff] %vm712_vm0, %v705_v31 }
 0x78d   :  { %v703_v32 = vpop.permute.xlu0 %702 }
 0x78e   :  { %714 = vst.msk [vmem:[#allocation2 + $0x48] sm:$0xff] %vm712_vm0, %v703_v32 }
 0x78f   :  { %v701_v33 = vpop.permute.xlu1 %700 }
 0x790   :  { %713 = vst.msk [vmem:[#allocation2 + $0x40] sm:$0xff] %vm712_vm0, %v701_v33 }
 0x791   :  { %v690_v34 = vpop.permute.xlu0 %689  ;;  %v728_v35 = vld [vmem:[#allocation2 + $0x58] sm:$0xff] }
 0x792   :  { %699 = vst.msk [vmem:[#allocation2 + $0x38] sm:$0xff] %vm695_vm2, %v690_v34  ;;  %787 = vrot.lane.b32.xlu0 %v728_v35, %s2455_s23 }
 0x793   :  { %910 = vst.msk [vmem:[#allocation2 + $0x58] sm:$0xff] %vm649_vm15, %v2451_v7  ;;  %v688_v36 = vpop.permute.xlu1 %687  ;;  %v727_v37 = vld [vmem:[#allocation2 + $0x50] sm:$0xff] }
 0x794   :  { %698 = vst.msk [vmem:[#allocation2 + $0x30] sm:$0xff] %vm695_vm2, %v688_v36  ;;  %785 = vrot.lane.b32.xlu1 %v727_v37, %s2455_s23 }
 0x795   :  { %909 = vst.msk [vmem:[#allocation2 + $0x50] sm:$0xff] %vm649_vm15, %v2451_v7  ;;  %v686_v38 = vpop.permute.xlu0 %685  ;;  %v726_v39 = vld [vmem:[#allocation2 + $0x48] sm:$0xff] }
 0x796   :  { %697 = vst.msk [vmem:[#allocation2 + $0x28] sm:$0xff] %vm695_vm2, %v686_v38  ;;  %783 = vrot.lane.b32.xlu0 %v726_v39, %s2455_s23 }
 0x797   :  { %908 = vst.msk [vmem:[#allocation2 + $0x48] sm:$0xff] %vm649_vm15, %v2451_v7  ;;  %v684_v40 = vpop.permute.xlu1 %683  ;;  %v725_v41 = vld [vmem:[#allocation2 + $0x40] sm:$0xff] }
 0x798   :  { %696 = vst.msk [vmem:[#allocation2 + $0x20] sm:$0xff] %vm695_vm2, %v684_v40  ;;  %781 = vrot.lane.b32.xlu1 %v725_v41, %s2455_s23 }
 0x799   :  { %907 = vst.msk [vmem:[#allocation2 + $0x40] sm:$0xff] %vm649_vm15, %v2451_v7  ;;  %v673_v42 = vpop.permute.xlu0 %672  ;;  %v724_v43 = vld [vmem:[#allocation2 + $0x38] sm:$0xff] }
 0x79a   :  { %682 = vst.msk [vmem:[#allocation2 + $0x18] sm:$0xff] %vm678_vm4, %v673_v42  ;;  %779 = vrot.lane.b32.xlu0 %v724_v43, %s2455_s23 }
 0x79b   :  { %906 = vst.msk [vmem:[#allocation2 + $0x38] sm:$0xff] %vm649_vm15, %v2451_v7  ;;  %v671_v44 = vpop.permute.xlu1 %670  ;;  %v723_v45 = vld [vmem:[#allocation2 + $0x30] sm:$0xff] }
 0x79c   :  { %681 = vst.msk [vmem:[#allocation2 + $0x10] sm:$0xff] %vm678_vm4, %v671_v44  ;;  %777 = vrot.lane.b32.xlu1 %v723_v45, %s2455_s23 }
 0x79d   :  { %905 = vst.msk [vmem:[#allocation2 + $0x30] sm:$0xff] %vm649_vm15, %v2451_v7  ;;  %v669_v47 = vpop.permute.xlu0 %668  ;;  %v722_v48 = vld [vmem:[#allocation2 + $0x28] sm:$0xff] }
 0x79e   :  { %680 = vst.msk [vmem:[#allocation2 + $0x8] sm:$0xff] %vm678_vm4, %v669_v47  ;;  %775 = vrot.lane.b32.xlu0 %v722_v48, %s2455_s23 }
 0x79f   :  { %904 = vst.msk [vmem:[#allocation2 + $0x28] sm:$0xff] %vm649_vm15, %v2451_v7  ;;  %v667_v49 = vpop.permute.xlu1 %666  ;;  %v721_v50 = vld [vmem:[#allocation2 + $0x20] sm:$0xff] }
 0x7a0   :  { %679 = vst.msk [vmem:[#allocation2] sm:$0xff] %vm678_vm4, %v667_v49  ;;  %773 = vrot.lane.b32.xlu1 %v721_v50, %s2455_s23 }
 0x7a1   :  { %903 = vst.msk [vmem:[#allocation2 + $0x20] sm:$0xff] %vm649_vm15, %v2451_v7  ;;  %v720_v51 = vld [vmem:[#allocation2 + $0x18] sm:$0xff] }
 0x7a2   :  { %771 = vrot.lane.b32.xlu0 %v720_v51, %s2455_s23  ;;  %902 = vst.msk [vmem:[#allocation2 + $0x18] sm:$0xff] %vm649_vm15, %v2451_v7 }
 0x7a3   :  { %v719_v52 = vld [vmem:[#allocation2 + $0x10] sm:$0xff] }
 0x7a4   :  { %769 = vrot.lane.b32.xlu1 %v719_v52, %s2455_s23  ;;  %901 = vst.msk [vmem:[#allocation2 + $0x10] sm:$0xff] %vm649_vm15, %v2451_v7  ;;  %v978_v52 = vld [vmem:[#allocation5 + $0x68] sm:$0xff] }
 0x7a5   :  { %v718_v53 = vld [vmem:[#allocation2 + $0x8] sm:$0xff] }
 0x7a6   :  { %767 = vrot.lane.b32.xlu0 %v718_v53, %s2455_s23  ;;  %900 = vst.msk [vmem:[#allocation2 + $0x8] sm:$0xff] %vm649_vm15, %v2451_v7  ;;  %v977_v53 = vld [vmem:[#allocation5 + $0x60] sm:$0xff] }
 0x7a7   :  { %v717_v54 = vld [vmem:[#allocation2] sm:$0xff] }
 0x7a8   :  { %765 = vrot.lane.b32.xlu1 %v717_v54, %s2455_s23  ;;  %899 = vst.msk [vmem:[#allocation2] sm:$0xff] %vm649_vm15, %v2451_v7  ;;  %v976_v54 = vld [vmem:[#allocation5 + $0x58] sm:$0xff] }
 0x7aa   :  { %750 = vperm.xlu0 %2396, %v732_v55  }
 0x7ac   :  { %745 = vperm.xlu1 %2395, %v731_v56  }
 0x7ae   :  { %740 = vperm.xlu0 %2396, %v730_v57  }
 0x7b0   :  { %735 = vperm.xlu1 %2395, %v729_v46  }
 0x804   :  { %v788_v58 = vpop.permute.xlu0 %787 }
 0x805   :  { %2228 = vmatprep.subr.mxu1 %v788_v58 }
 0x806   :  { %2229 = vmatpush3.msra.mxu1 %v788_v58  ;;  %v786_v59 = vpop.permute.xlu1 %785 }
 0x807   :  { %2230 = vmatprep.subr.mxu1 %v786_v59 }
 0x808   :  { %v784_v60 = vpop.permute.xlu0 %783  ;;  %2231 = vmatpush3.msra.mxu1 %v786_v59 }
 0x809   :  { %2232 = vmatprep.subr.mxu1 %v784_v60 }
 0x80a   :  { %2233 = vmatpush3.msra.mxu1 %v784_v60  ;;  %v782_v61 = vpop.permute.xlu1 %781 }
 0x80b   :  { %2234 = vmatprep.subr.mxu1 %v782_v61 }
 0x80c   :  { %v780_v62 = vpop.permute.xlu0 %779  ;;  %2235 = vmatpush3.msra.mxu1 %v782_v61 }
 0x80d   :  { %2236 = vmatprep.subr.mxu1 %v780_v62 }
 0x80e   :  { %2237 = vmatpush3.msra.mxu1 %v780_v62  ;;  %v778_v63 = vpop.permute.xlu1 %777 }
 0x80f   :  { %2238 = vmatprep.subr.mxu1 %v778_v63 }
 0x810   :  { %v776_v0 = vpop.permute.xlu0 %775  ;;  %2239 = vmatpush3.msra.mxu1 %v778_v63 }
 0x811   :  { %2240 = vmatprep.subr.mxu1 %v776_v0 }
 0x812   :  { %2241 = vmatpush3.msra.mxu1 %v776_v0  ;;  %v774_v1 = vpop.permute.xlu1 %773 }
 0x813   :  { %2242 = vmatprep.subr.mxu1 %v774_v1 }
 0x814   :  { %v772_v2 = vpop.permute.xlu0 %771  ;;  %2243 = vmatpush3.msra.mxu1 %v774_v1 }
 0x815   :  { %2244 = vmatprep.subr.mxu1 %v772_v2 }
 0x816   :  { %2245 = vmatpush3.msra.mxu1 %v772_v2  ;;  %v770_v3 = vpop.permute.xlu1 %769 }
 0x817   :  { %2246 = vmatprep.subr.mxu1 %v770_v3 }
 0x818   :  { %v768_v4 = vpop.permute.xlu0 %767  ;;  %2247 = vmatpush3.msra.mxu1 %v770_v3 }
 0x819   :  { %2248 = vmatprep.subr.mxu1 %v768_v4 }
 0x81a   :  { %2249 = vmatpush3.msra.mxu1 %v768_v4  ;;  %v766_v5 = vpop.permute.xlu1 %765 }
 0x81b   :  { %2250 = vmatprep.subr.mxu1 %v766_v5 }
 0x81c   :  { %2251 = vmatpush3.msra.mxu1 %v766_v5 }
 0x81d   :  { %2253 = vmatmul.mubr.msk.f32.vlgmr.msra.gmra.mxu1 %vm801_vm5, %v730_v57 }
 0x81e   :  { %2255 = vmatprep.mubr.msk.f32.mxu1 %vm801_vm5, %v731_v56 }
 0x821   :  { %2256 = vmatmul.mubr.msk.f32.gmra.mxu1 %vm801_vm5, %v732_v55 }
 0x825   :  { %v751_v6 = vpop.permute.xlu0 %750 }
 0x827   :  { %v746_v9 = vpop.permute.xlu1 %745 }
 0x829   :  { %v741_v13 = vpop.permute.xlu0 %740 }
 0x82b   :  { %v736_v18 = vpop.permute.xlu1 %735 }
 0x8dd   :  { %v2254_v8 = vpop.f32.mrf.mxu1 }
 0x8de   :  { %v882_v15 = vadd.f32 %v2254_v8, %v741_v13 }
 0x8df   :  { %v876_v10 = vpop.f32.mrf.mxu1 }
 0x8e0   :  { %v877_v19 = vadd.f32 %v876_v10, %v736_v18  ;;  %v896_v21 = vmax.f32 %v882_v15, 0.0 }
 0x8e1   :  { %v2257_v11 = vpop.f32.mrf.mxu1 }
 0x8e2   :  { %v892_v12 = vadd.f32 %v2257_v11, %v751_v6  ;;  %v895_v22 = vmax.f32 %v877_v19, 0.0 }
 0x8e3   :  { %v886_v14 = vpop.f32.mrf.mxu1 }
 0x8e4   :  { %v898_v16 = vmax.f32 %v892_v12, 0.0  ;;  %v887_v17 = vadd.f32 %v886_v14, %v746_v9 }
 0x8e6   :  { %v897_v20 = vmax.f32 %v887_v17, 0.0  ;;  %953 = vrot.lane.b32.xlu0 %v898_v16, %s2450_s18 }
 0x8e8   :  { %951 = vrot.lane.b32.xlu1 %v897_v20, %s2450_s18 }
 0x8ea   :  { %949 = vrot.lane.b32.xlu0 %v896_v21, %s2450_s18 }
 0x8ec   :  { %947 = vrot.lane.b32.xlu1 %v895_v22, %s2450_s18 }
 0x8ee   :  { %937 = vrot.lane.b32.xlu0 %v898_v16, %s2453_s21 }
 0x8f0   :  { %935 = vrot.lane.b32.xlu1 %v897_v20, %s2453_s21 }
 0x8f2   :  { %933 = vrot.lane.b32.xlu0 %v896_v21, %s2453_s21 }
 0x8f4   :  { %931 = vrot.lane.b32.xlu1 %v895_v22, %s2453_s21 }
 0x8f6   :  { %921 = vrot.lane.b32.xlu0 %v898_v16, %s2457_s24 }
 0x8f8   :  { %919 = vrot.lane.b32.xlu1 %v897_v20, %s2457_s24 }
 0x8fa   :  { %917 = vrot.lane.b32.xlu0 %v896_v21, %s2457_s24 }
 0x8fc   :  { %915 = vrot.lane.b32.xlu1 %v895_v22, %s2457_s24 }
 0x958   :  { %v954_v25 = vpop.permute.xlu0 %953 }
 0x959   :  { %962 = vst.msk [vmem:[#allocation2 + $0x58] sm:$0xff] %vm712_vm0, %v954_v25 }
 0x95a   :  { %v952_v26 = vpop.permute.xlu1 %951 }
 0x95b   :  { %961 = vst.msk [vmem:[#allocation2 + $0x50] sm:$0xff] %vm712_vm0, %v952_v26 }
 0x95c   :  { %v950_v30 = vpop.permute.xlu0 %949 }
 0x95d   :  { %960 = vst.msk [vmem:[#allocation2 + $0x48] sm:$0xff] %vm712_vm0, %v950_v30 }
 0x95e   :  { %v948_v31 = vpop.permute.xlu1 %947 }
 0x95f   :  { %959 = vst.msk [vmem:[#allocation2 + $0x40] sm:$0xff] %vm712_vm0, %v948_v31 }
 0x960   :  { %v938_v32 = vpop.permute.xlu0 %937  ;;  %v974_v33 = vld [vmem:[#allocation2 + $0x58] sm:$0xff] }
 0x961   :  { %946 = vst.msk [vmem:[#allocation2 + $0x38] sm:$0xff] %vm695_vm2, %v938_v32  ;;  %1033 = vrot.lane.b32.xlu0 %v974_v33, %s2455_s23 }
 0x962   :  { %v936_v34 = vpop.permute.xlu1 %935  ;;  %v973_v35 = vld [vmem:[#allocation2 + $0x50] sm:$0xff]  ;;  %1160 = vst.msk [vmem:[#allocation2 + $0x58] sm:$0xff] %vm1148_vm6, %v2451_v7 }
 0x963   :  { %945 = vst.msk [vmem:[#allocation2 + $0x30] sm:$0xff] %vm695_vm2, %v936_v34  ;;  %1031 = vrot.lane.b32.xlu1 %v973_v35, %s2455_s23 }
 0x964   :  { %v934_v36 = vpop.permute.xlu0 %933  ;;  %v972_v37 = vld [vmem:[#allocation2 + $0x48] sm:$0xff]  ;;  %1159 = vst.msk [vmem:[#allocation2 + $0x50] sm:$0xff] %vm1148_vm6, %v2451_v7 }
 0x965   :  { %944 = vst.msk [vmem:[#allocation2 + $0x28] sm:$0xff] %vm695_vm2, %v934_v36  ;;  %1029 = vrot.lane.b32.xlu0 %v972_v37, %s2455_s23 }
 0x966   :  { %v932_v38 = vpop.permute.xlu1 %931  ;;  %v971_v39 = vld [vmem:[#allocation2 + $0x40] sm:$0xff]  ;;  %1158 = vst.msk [vmem:[#allocation2 + $0x48] sm:$0xff] %vm1148_vm6, %v2451_v7 }
 0x967   :  { %943 = vst.msk [vmem:[#allocation2 + $0x20] sm:$0xff] %vm695_vm2, %v932_v38  ;;  %1027 = vrot.lane.b32.xlu1 %v971_v39, %s2455_s23 }
 0x968   :  { %v922_v40 = vpop.permute.xlu0 %921  ;;  %v970_v41 = vld [vmem:[#allocation2 + $0x38] sm:$0xff]  ;;  %1157 = vst.msk [vmem:[#allocation2 + $0x40] sm:$0xff] %vm1148_vm6, %v2451_v7 }
 0x969   :  { %930 = vst.msk [vmem:[#allocation2 + $0x18] sm:$0xff] %vm678_vm4, %v922_v40  ;;  %1025 = vrot.lane.b32.xlu0 %v970_v41, %s2455_s23 }
 0x96a   :  { %v920_v42 = vpop.permute.xlu1 %919  ;;  %v969_v43 = vld [vmem:[#allocation2 + $0x30] sm:$0xff]  ;;  %1156 = vst.msk [vmem:[#allocation2 + $0x38] sm:$0xff] %vm1148_vm6, %v2451_v7 }
 0x96b   :  { %929 = vst.msk [vmem:[#allocation2 + $0x10] sm:$0xff] %vm678_vm4, %v920_v42  ;;  %1023 = vrot.lane.b32.xlu1 %v969_v43, %s2455_s23 }
 0x96c   :  { %v918_v44 = vpop.permute.xlu0 %917  ;;  %v968_v45 = vld [vmem:[#allocation2 + $0x28] sm:$0xff]  ;;  %1155 = vst.msk [vmem:[#allocation2 + $0x30] sm:$0xff] %vm1148_vm6, %v2451_v7 }
 0x96d   :  { %928 = vst.msk [vmem:[#allocation2 + $0x8] sm:$0xff] %vm678_vm4, %v918_v44  ;;  %1021 = vrot.lane.b32.xlu0 %v968_v45, %s2455_s23 }
 0x96e   :  { %v916_v46 = vpop.permute.xlu1 %915  ;;  %v967_v47 = vld [vmem:[#allocation2 + $0x20] sm:$0xff]  ;;  %1154 = vst.msk [vmem:[#allocation2 + $0x28] sm:$0xff] %vm1148_vm6, %v2451_v7 }
 0x96f   :  { %927 = vst.msk [vmem:[#allocation2] sm:$0xff] %vm678_vm4, %v916_v46  ;;  %1019 = vrot.lane.b32.xlu1 %v967_v47, %s2455_s23 }
 0x970   :  { %v966_v48 = vld [vmem:[#allocation2 + $0x18] sm:$0xff]  ;;  %1153 = vst.msk [vmem:[#allocation2 + $0x20] sm:$0xff] %vm1148_vm6, %v2451_v7 }
 0x971   :  { %1017 = vrot.lane.b32.xlu0 %v966_v48, %s2455_s23  ;;  %1152 = vst.msk [vmem:[#allocation2 + $0x18] sm:$0xff] %vm1148_vm6, %v2451_v7 }
 0x972   :  { %v965_v49 = vld [vmem:[#allocation2 + $0x10] sm:$0xff] }
 0x973   :  { %1015 = vrot.lane.b32.xlu1 %v965_v49, %s2455_s23  ;;  %1151 = vst.msk [vmem:[#allocation2 + $0x10] sm:$0xff] %vm1148_vm6, %v2451_v7  ;;  %v1229_v49 = vld [vmem:[#allocation5 + $0x88] sm:$0xff] }
 0x974   :  { %v964_v50 = vld [vmem:[#allocation2 + $0x8] sm:$0xff] }
 0x975   :  { %1013 = vrot.lane.b32.xlu0 %v964_v50, %s2455_s23  ;;  %1150 = vst.msk [vmem:[#allocation2 + $0x8] sm:$0xff] %vm1148_vm6, %v2451_v7  ;;  %v1228_v50 = vld [vmem:[#allocation5 + $0x80] sm:$0xff] }
 0x976   :  { %v963_v51 = vld [vmem:[#allocation2] sm:$0xff] }
 0x977   :  { %1011 = vrot.lane.b32.xlu1 %v963_v51, %s2455_s23  ;;  %1149 = vst.msk [vmem:[#allocation2] sm:$0xff] %vm1148_vm6, %v2451_v7  ;;  %v1227_v51 = vld [vmem:[#allocation5 + $0x78] sm:$0xff] }
 0x979   :  { %996 = vperm.xlu0 %2396, %v978_v52  }
 0x97b   :  { %991 = vperm.xlu1 %2395, %v977_v53  }
 0x97d   :  { %986 = vperm.xlu0 %2396, %v976_v54  }
 0x97f   :  { %981 = vperm.xlu1 %2395, %v975_v24  }
 0x9d3   :  { %v1034_v55 = vpop.permute.xlu0 %1033 }
 0x9d4   :  { %2258 = vmatprep.subr.mxu0 %v1034_v55 }
 0x9d5   :  { %2259 = vmatpush3.msra.mxu0 %v1034_v55  ;;  %v1032_v56 = vpop.permute.xlu1 %1031 }
 0x9d6   :  { %2260 = vmatprep.subr.mxu0 %v1032_v56 }
 0x9d7   :  { %v1030_v57 = vpop.permute.xlu0 %1029  ;;  %2261 = vmatpush3.msra.mxu0 %v1032_v56 }
 0x9d8   :  { %2262 = vmatprep.subr.mxu0 %v1030_v57 }
 0x9d9   :  { %2263 = vmatpush3.msra.mxu0 %v1030_v57  ;;  %v1028_v58 = vpop.permute.xlu1 %1027 }
 0x9da   :  { %2264 = vmatprep.subr.mxu0 %v1028_v58 }
 0x9db   :  { %v1026_v59 = vpop.permute.xlu0 %1025  ;;  %2265 = vmatpush3.msra.mxu0 %v1028_v58 }
 0x9dc   :  { %2266 = vmatprep.subr.mxu0 %v1026_v59 }
 0x9dd   :  { %2267 = vmatpush3.msra.mxu0 %v1026_v59  ;;  %v1024_v60 = vpop.permute.xlu1 %1023 }
 0x9de   :  { %2268 = vmatprep.subr.mxu0 %v1024_v60 }
 0x9df   :  { %v1022_v61 = vpop.permute.xlu0 %1021  ;;  %2269 = vmatpush3.msra.mxu0 %v1024_v60 }
 0x9e0   :  { %2270 = vmatprep.subr.mxu0 %v1022_v61 }
 0x9e1   :  { %2271 = vmatpush3.msra.mxu0 %v1022_v61  ;;  %v1020_v62 = vpop.permute.xlu1 %1019 }
 0x9e2   :  { %2272 = vmatprep.subr.mxu0 %v1020_v62 }
 0x9e3   :  { %v1018_v63 = vpop.permute.xlu0 %1017  ;;  %2273 = vmatpush3.msra.mxu0 %v1020_v62 }
 0x9e4   :  { %2274 = vmatprep.subr.mxu0 %v1018_v63 }
 0x9e5   :  { %2275 = vmatpush3.msra.mxu0 %v1018_v63  ;;  %v1016_v0 = vpop.permute.xlu1 %1015 }
 0x9e6   :  { %2276 = vmatprep.subr.mxu0 %v1016_v0 }
 0x9e7   :  { %v1014_v1 = vpop.permute.xlu0 %1013  ;;  %2277 = vmatpush3.msra.mxu0 %v1016_v0 }
 0x9e8   :  { %2278 = vmatprep.subr.mxu0 %v1014_v1 }
 0x9e9   :  { %2279 = vmatpush3.msra.mxu0 %v1014_v1  ;;  %v1012_v2 = vpop.permute.xlu1 %1011 }
 0x9ea   :  { %2280 = vmatprep.subr.mxu0 %v1012_v2 }
 0x9eb   :  { %2281 = vmatpush3.msra.mxu0 %v1012_v2 }
 0x9ec   :  { %2283 = vmatmul.mubr.msk.f32.vlgmr.msra.gmra.mxu0 %vm801_vm5, %v976_v54 }
 0x9ed   :  { %2285 = vmatprep.mubr.msk.f32.mxu0 %vm801_vm5, %v977_v53 }
 0x9f0   :  { %2286 = vmatmul.mubr.msk.f32.gmra.mxu0 %vm801_vm5, %v978_v52 }
 0x9f4   :  { %v997_v3 = vpop.permute.xlu0 %996 }
 0x9f6   :  { %v992_v4 = vpop.permute.xlu1 %991 }
 0x9f8   :  { %v987_v8 = vpop.permute.xlu0 %986 }
 0x9fa   :  { %v982_v12 = vpop.permute.xlu1 %981 }
 0xaac   :  { %v2284_v5 = vpop.f32.mrf.mxu0 }
 0xaad   :  { %v1127_v10 = vadd.f32 %v2284_v5, %v987_v8 }
 0xaae   :  { %v1121_v6 = vpop.f32.mrf.mxu0 }
 0xaaf   :  { %v1122_v14 = vadd.f32 %v1121_v6, %v982_v12  ;;  %v1141_v17 = vadd.f32 %v1127_v10, %v2574_v28 }
 0xab0   :  { %v2287_v9 = vpop.f32.mrf.mxu0 }
 0xab1   :  { %v1137_v11 = vadd.f32 %v2287_v9, %v997_v3  ;;  %v1140_v20 = vadd.f32 %v1122_v14, %v2578_v29  ;;  %v2726_v22 = vmax.f32 %v1141_v17, 0.0  ;;  %v2820_v17 = vld [vmem:[#allocation5 + $0x90] sm:$0xff] }
 0xab2   :  { %v1131_v13 = vpop.f32.mrf.mxu0  ;;  %2342 = vmatprep.mubr.msk.f32.mxu0 %vm801_vm5, %v2820_v17 }
 0xab3   :  { %v1143_v15 = vadd.f32 %v1137_v11, %v2568_v23  ;;  %v1132_v16 = vadd.f32 %v1131_v13, %v992_v4  ;;  %v2730_v23 = vmax.f32 %v1140_v20, 0.0 }
 0xab5   :  { %v2718_v18 = vmax.f32 %v1143_v15, 0.0  ;;  %v1142_v19 = vadd.f32 %v1132_v16, %v2570_v27  ;;  %v2752_v27 = vld [vmem:[#allocation5 + $0x70] sm:$0xff] }
 0xab6   :  { %2312 = vmatprep.mubr.msk.f32.mxu1 %vm801_vm5, %v2752_v27 }
 0xab7   :  { %v2722_v21 = vmax.f32 %v1142_v19, 0.0  ;;  %1204 = vrot.lane.b32.xlu0 %v2718_v18, %s2450_s18 }
 0xab9   :  { %1202 = vrot.lane.b32.xlu1 %v2722_v21, %s2450_s18 }
 0xabb   :  { %1200 = vrot.lane.b32.xlu0 %v2726_v22, %s2450_s18 }
 0xabd   :  { %1198 = vrot.lane.b32.xlu1 %v2730_v23, %s2450_s18 }
 0xabf   :  { %1188 = vrot.lane.b32.xlu0 %v2718_v18, %s2457_s24 }
 0xac1   :  { %1186 = vrot.lane.b32.xlu1 %v2722_v21, %s2457_s24 }
 0xac3   :  { %1184 = vrot.lane.b32.xlu0 %v2726_v22, %s2457_s24 }
 0xac5   :  { %1182 = vrot.lane.b32.xlu1 %v2730_v23, %s2457_s24 }
 0xac7   :  { %1171 = vrot.lane.b32.xlu0 %v2718_v18, %s2458_s25 }
 0xac9   :  { %1169 = vrot.lane.b32.xlu1 %v2722_v21, %s2458_s25 }
 0xacb   :  { %1167 = vrot.lane.b32.xlu0 %v2726_v22, %s2458_s25 }
 0xacd   :  { %1165 = vrot.lane.b32.xlu1 %v2730_v23, %s2458_s25 }
 0xb29   :  { %v1205_v28 = vpop.permute.xlu0 %1204 }
 0xb2a   :  { %1213 = vst.msk [vmem:[#allocation2 + $0x58] sm:$0xff] %vm712_vm0, %v1205_v28 }
 0xb2b   :  { %v1203_v29 = vpop.permute.xlu1 %1202 }
 0xb2c   :  { %1212 = vst.msk [vmem:[#allocation2 + $0x50] sm:$0xff] %vm712_vm0, %v1203_v29 }
 0xb2d   :  { %v1201_v24 = vpop.permute.xlu0 %1200 }
 0xb2e   :  { %1211 = vst.msk [vmem:[#allocation2 + $0x48] sm:$0xff] %vm712_vm0, %v1201_v24 }
 0xb2f   :  { %v1199_v25 = vpop.permute.xlu1 %1198 }
 0xb30   :  { %1210 = vst.msk [vmem:[#allocation2 + $0x40] sm:$0xff] %vm712_vm0, %v1199_v25 }
 0xb31   :  { %v1189_v26 = vpop.permute.xlu0 %1188  ;;  %v1225_v30 = vld [vmem:[#allocation2 + $0x58] sm:$0xff] }
 0xb32   :  { %1197 = vst.msk [vmem:[#allocation2 + $0x38] sm:$0xff] %vm678_vm4, %v1189_v26  ;;  %1284 = vrot.lane.b32.xlu0 %v1225_v30, %s2455_s23 }
 0xb33   :  { %1406 = vst.msk [vmem:[#allocation2 + $0x58] sm:$0xff] %vm1148_vm6, %v2451_v7  ;;  %v1187_v31 = vpop.permute.xlu1 %1186  ;;  %v1224_v32 = vld [vmem:[#allocation2 + $0x50] sm:$0xff] }
 0xb34   :  { %1196 = vst.msk [vmem:[#allocation2 + $0x30] sm:$0xff] %vm678_vm4, %v1187_v31  ;;  %1282 = vrot.lane.b32.xlu1 %v1224_v32, %s2455_s23 }
 0xb35   :  { %1405 = vst.msk [vmem:[#allocation2 + $0x50] sm:$0xff] %vm1148_vm6, %v2451_v7  ;;  %v1185_v33 = vpop.permute.xlu0 %1184  ;;  %v1223_v34 = vld [vmem:[#allocation2 + $0x48] sm:$0xff] }
 0xb36   :  { %1195 = vst.msk [vmem:[#allocation2 + $0x28] sm:$0xff] %vm678_vm4, %v1185_v33  ;;  %1280 = vrot.lane.b32.xlu0 %v1223_v34, %s2455_s23 }
 0xb37   :  { %1404 = vst.msk [vmem:[#allocation2 + $0x48] sm:$0xff] %vm1148_vm6, %v2451_v7  ;;  %v1183_v35 = vpop.permute.xlu1 %1182  ;;  %v1222_v36 = vld [vmem:[#allocation2 + $0x40] sm:$0xff] }
 0xb38   :  { %1194 = vst.msk [vmem:[#allocation2 + $0x20] sm:$0xff] %vm678_vm4, %v1183_v35  ;;  %1278 = vrot.lane.b32.xlu1 %v1222_v36, %s2455_s23 }
 0xb39   :  { %1403 = vst.msk [vmem:[#allocation2 + $0x40] sm:$0xff] %vm1148_vm6, %v2451_v7  ;;  %v1172_v37 = vpop.permute.xlu0 %1171  ;;  %v1221_v38 = vld [vmem:[#allocation2 + $0x38] sm:$0xff] }
 0xb3a   :  { %1181 = vst.msk [vmem:[#allocation2 + $0x18] sm:$0xff] %vm1177_vm7, %v1172_v37  ;;  %1276 = vrot.lane.b32.xlu0 %v1221_v38, %s2455_s23 }
 0xb3b   :  { %1402 = vst.msk [vmem:[#allocation2 + $0x38] sm:$0xff] %vm1148_vm6, %v2451_v7  ;;  %v1170_v39 = vpop.permute.xlu1 %1169  ;;  %v1220_v40 = vld [vmem:[#allocation2 + $0x30] sm:$0xff] }
 0xb3c   :  { %1180 = vst.msk [vmem:[#allocation2 + $0x10] sm:$0xff] %vm1177_vm7, %v1170_v39  ;;  %1274 = vrot.lane.b32.xlu1 %v1220_v40, %s2455_s23 }
 0xb3d   :  { %1401 = vst.msk [vmem:[#allocation2 + $0x30] sm:$0xff] %vm1148_vm6, %v2451_v7  ;;  %v1168_v41 = vpop.permute.xlu0 %1167  ;;  %v1219_v42 = vld [vmem:[#allocation2 + $0x28] sm:$0xff] }
 0xb3e   :  { %1179 = vst.msk [vmem:[#allocation2 + $0x8] sm:$0xff] %vm1177_vm7, %v1168_v41  ;;  %1272 = vrot.lane.b32.xlu0 %v1219_v42, %s2455_s23 }
 0xb3f   :  { %1400 = vst.msk [vmem:[#allocation2 + $0x28] sm:$0xff] %vm1148_vm6, %v2451_v7  ;;  %v1166_v43 = vpop.permute.xlu1 %1165  ;;  %v1218_v44 = vld [vmem:[#allocation2 + $0x20] sm:$0xff] }
 0xb40   :  { %1178 = vst.msk [vmem:[#allocation2] sm:$0xff] %vm1177_vm7, %v1166_v43  ;;  %1270 = vrot.lane.b32.xlu1 %v1218_v44, %s2455_s23 }
 0xb41   :  { %1399 = vst.msk [vmem:[#allocation2 + $0x20] sm:$0xff] %vm1148_vm6, %v2451_v7  ;;  %v1217_v45 = vld [vmem:[#allocation2 + $0x18] sm:$0xff] }
 0xb42   :  { %1268 = vrot.lane.b32.xlu0 %v1217_v45, %s2455_s23  ;;  %1398 = vst.msk [vmem:[#allocation2 + $0x18] sm:$0xff] %vm1148_vm6, %v2451_v7 }
 0xb43   :  { %v1216_v46 = vld [vmem:[#allocation2 + $0x10] sm:$0xff] }
 0xb44   :  { %1266 = vrot.lane.b32.xlu1 %v1216_v46, %s2455_s23  ;;  %1397 = vst.msk [vmem:[#allocation2 + $0x10] sm:$0xff] %vm1148_vm6, %v2451_v7  ;;  %v1474_v46 = vld [vmem:[#allocation5 + $0xa8] sm:$0xff] }
 0xb45   :  { %v1215_v47 = vld [vmem:[#allocation2 + $0x8] sm:$0xff] }
 0xb46   :  { %1264 = vrot.lane.b32.xlu0 %v1215_v47, %s2455_s23  ;;  %1396 = vst.msk [vmem:[#allocation2 + $0x8] sm:$0xff] %vm1148_vm6, %v2451_v7  ;;  %v1473_v47 = vld [vmem:[#allocation5 + $0xa0] sm:$0xff] }
 0xb47   :  { %v1214_v48 = vld [vmem:[#allocation2] sm:$0xff] }
 0xb48   :  { %1262 = vrot.lane.b32.xlu1 %v1214_v48, %s2455_s23  ;;  %1395 = vst.msk [vmem:[#allocation2] sm:$0xff] %vm1148_vm6, %v2451_v7  ;;  %v1472_v48 = vld [vmem:[#allocation5 + $0x98] sm:$0xff] }
 0xb4a   :  { %1247 = vperm.xlu0 %2396, %v1229_v49  }
 0xb4c   :  { %1242 = vperm.xlu1 %2395, %v1228_v50  }
 0xb4e   :  { %1237 = vperm.xlu0 %2396, %v1227_v51  }
 0xb50   :  { %1232 = vperm.xlu1 %2395, %v2752_v27  }
 0xba4   :  { %v1285_v52 = vpop.permute.xlu0 %1284 }
 0xba5   :  { %2288 = vmatprep.subr.mxu1 %v1285_v52 }
 0xba6   :  { %2289 = vmatpush3.msra.mxu1 %v1285_v52  ;;  %v1283_v53 = vpop.permute.xlu1 %1282 }
 0xba7   :  { %2290 = vmatprep.subr.mxu1 %v1283_v53 }
 0xba8   :  { %v1281_v54 = vpop.permute.xlu0 %1280  ;;  %2291 = vmatpush3.msra.mxu1 %v1283_v53 }
 0xba9   :  { %2292 = vmatprep.subr.mxu1 %v1281_v54 }
 0xbaa   :  { %2293 = vmatpush3.msra.mxu1 %v1281_v54  ;;  %v1279_v55 = vpop.permute.xlu1 %1278 }
 0xbab   :  { %2294 = vmatprep.subr.mxu1 %v1279_v55 }
 0xbac   :  { %v1277_v56 = vpop.permute.xlu0 %1276  ;;  %2295 = vmatpush3.msra.mxu1 %v1279_v55 }
 0xbad   :  { %2296 = vmatprep.subr.mxu1 %v1277_v56 }
 0xbae   :  { %2297 = vmatpush3.msra.mxu1 %v1277_v56  ;;  %v1275_v57 = vpop.permute.xlu1 %1274 }
 0xbaf   :  { %2298 = vmatprep.subr.mxu1 %v1275_v57 }
 0xbb0   :  { %v1273_v58 = vpop.permute.xlu0 %1272  ;;  %2299 = vmatpush3.msra.mxu1 %v1275_v57 }
 0xbb1   :  { %2300 = vmatprep.subr.mxu1 %v1273_v58 }
 0xbb2   :  { %2301 = vmatpush3.msra.mxu1 %v1273_v58  ;;  %v1271_v59 = vpop.permute.xlu1 %1270 }
 0xbb3   :  { %2302 = vmatprep.subr.mxu1 %v1271_v59 }
 0xbb4   :  { %v1269_v60 = vpop.permute.xlu0 %1268  ;;  %2303 = vmatpush3.msra.mxu1 %v1271_v59 }
 0xbb5   :  { %2304 = vmatprep.subr.mxu1 %v1269_v60 }
 0xbb6   :  { %2305 = vmatpush3.msra.mxu1 %v1269_v60  ;;  %v1267_v61 = vpop.permute.xlu1 %1266 }
 0xbb7   :  { %2306 = vmatprep.subr.mxu1 %v1267_v61 }
 0xbb8   :  { %v1265_v62 = vpop.permute.xlu0 %1264  ;;  %2307 = vmatpush3.msra.mxu1 %v1267_v61 }
 0xbb9   :  { %2308 = vmatprep.subr.mxu1 %v1265_v62 }
 0xbba   :  { %2309 = vmatpush3.msra.mxu1 %v1265_v62  ;;  %v1263_v63 = vpop.permute.xlu1 %1262 }
 0xbbb   :  { %2310 = vmatprep.subr.mxu1 %v1263_v63 }
 0xbbc   :  { %2311 = vmatpush3.msra.mxu1 %v1263_v63 }
 0xbbd   :  { %2313 = vmatmul.mubr.msk.f32.vlgmr.msra.gmra.mxu1 %vm801_vm5, %v1227_v51 }
 0xbbe   :  { %2315 = vmatprep.mubr.msk.f32.mxu1 %vm801_vm5, %v1228_v50 }
 0xbc1   :  { %2316 = vmatmul.mubr.msk.f32.gmra.mxu1 %vm801_vm5, %v1229_v49 }
 0xbc5   :  { %v1248_v0 = vpop.permute.xlu0 %1247 }
 0xbc7   :  { %v1243_v2 = vpop.permute.xlu1 %1242 }
 0xbc9   :  { %v1238_v6 = vpop.permute.xlu0 %1237 }
 0xbcb   :  { %v1233_v12 = vpop.permute.xlu1 %1232 }
 0xc7d   :  { %v2314_v1 = vpop.f32.mrf.mxu1 }
 0xc7e   :  { %v1378_v9 = vadd.f32 %v2314_v1, %v1238_v6 }
 0xc7f   :  { %v1372_v3 = vpop.f32.mrf.mxu1 }
 0xc80   :  { %v1373_v13 = vadd.f32 %v1372_v3, %v1233_v12  ;;  %v1392_v15 = vmax.f32 %v1378_v9, 0.0 }
 0xc81   :  { %v2317_v4 = vpop.f32.mrf.mxu1 }
 0xc82   :  { %v1388_v5 = vadd.f32 %v2317_v4, %v1248_v0  ;;  %v1391_v16 = vmax.f32 %v1373_v13, 0.0 }
 0xc83   :  { %v1382_v8 = vpop.f32.mrf.mxu1 }
 0xc84   :  { %v1394_v10 = vmax.f32 %v1388_v5, 0.0  ;;  %v1383_v11 = vadd.f32 %v1382_v8, %v1243_v2 }
 0xc86   :  { %v1393_v14 = vmax.f32 %v1383_v11, 0.0  ;;  %1449 = vrot.lane.b32.xlu0 %v1394_v10, %s2450_s18 }
 0xc88   :  { %1447 = vrot.lane.b32.xlu1 %v1393_v14, %s2450_s18 }
 0xc8a   :  { %1445 = vrot.lane.b32.xlu0 %v1392_v15, %s2450_s18 }
 0xc8c   :  { %1443 = vrot.lane.b32.xlu1 %v1391_v16, %s2450_s18 }
 0xc8e   :  { %1433 = vrot.lane.b32.xlu0 %v1394_v10, %s2457_s24 }
 0xc90   :  { %1431 = vrot.lane.b32.xlu1 %v1393_v14, %s2457_s24 }
 0xc92   :  { %1429 = vrot.lane.b32.xlu0 %v1392_v15, %s2457_s24 }
 0xc94   :  { %1427 = vrot.lane.b32.xlu1 %v1391_v16, %s2457_s24 }
 0xc96   :  { %1417 = vrot.lane.b32.xlu0 %v1394_v10, %s2458_s25 }
 0xc98   :  { %1415 = vrot.lane.b32.xlu1 %v1393_v14, %s2458_s25 }
 0xc9a   :  { %1413 = vrot.lane.b32.xlu0 %v1392_v15, %s2458_s25 }
 0xc9c   :  { %1411 = vrot.lane.b32.xlu1 %v1391_v16, %s2458_s25 }
 0xcf8   :  { %v1450_v19 = vpop.permute.xlu0 %1449 }
 0xcf9   :  { %1458 = vst.msk [vmem:[#allocation2 + $0x58] sm:$0xff] %vm712_vm0, %v1450_v19 }
 0xcfa   :  { %v1448_v20 = vpop.permute.xlu1 %1447 }
 0xcfb   :  { %1457 = vst.msk [vmem:[#allocation2 + $0x50] sm:$0xff] %vm712_vm0, %v1448_v20 }
 0xcfc   :  { %v1446_v27 = vpop.permute.xlu0 %1445 }
 0xcfd   :  { %1456 = vst.msk [vmem:[#allocation2 + $0x48] sm:$0xff] %vm712_vm0, %v1446_v27 }
 0xcfe   :  { %v1444_v28 = vpop.permute.xlu1 %1443 }
 0xcff   :  { %1455 = vst.msk [vmem:[#allocation2 + $0x40] sm:$0xff] %vm712_vm0, %v1444_v28 }
 0xd00   :  { %v1434_v29 = vpop.permute.xlu0 %1433  ;;  %v1470_v24 = vld [vmem:[#allocation2 + $0x58] sm:$0xff] }
 0xd01   :  { %1442 = vst.msk [vmem:[#allocation2 + $0x38] sm:$0xff] %vm678_vm4, %v1434_v29  ;;  %1529 = vrot.lane.b32.xlu0 %v1470_v24, %s2455_s23 }
 0xd02   :  { %1655 = vst.msk [vmem:[#allocation2 + $0x58] sm:$0xff] %vm131_vm3, %v2451_v7  ;;  %v1432_v25 = vpop.permute.xlu1 %1431  ;;  %v1469_v26 = vld [vmem:[#allocation2 + $0x50] sm:$0xff] }
 0xd03   :  { %1441 = vst.msk [vmem:[#allocation2 + $0x30] sm:$0xff] %vm678_vm4, %v1432_v25  ;;  %1527 = vrot.lane.b32.xlu1 %v1469_v26, %s2455_s23 }
 0xd04   :  { %1654 = vst.msk [vmem:[#allocation2 + $0x50] sm:$0xff] %vm131_vm3, %v2451_v7  ;;  %v1430_v30 = vpop.permute.xlu0 %1429  ;;  %v1468_v31 = vld [vmem:[#allocation2 + $0x48] sm:$0xff] }
 0xd05   :  { %1440 = vst.msk [vmem:[#allocation2 + $0x28] sm:$0xff] %vm678_vm4, %v1430_v30  ;;  %1525 = vrot.lane.b32.xlu0 %v1468_v31, %s2455_s23 }
 0xd06   :  { %1653 = vst.msk [vmem:[#allocation2 + $0x48] sm:$0xff] %vm131_vm3, %v2451_v7  ;;  %v1428_v32 = vpop.permute.xlu1 %1427  ;;  %v1467_v33 = vld [vmem:[#allocation2 + $0x40] sm:$0xff] }
 0xd07   :  { %1439 = vst.msk [vmem:[#allocation2 + $0x20] sm:$0xff] %vm678_vm4, %v1428_v32  ;;  %1523 = vrot.lane.b32.xlu1 %v1467_v33, %s2455_s23 }
 0xd08   :  { %1652 = vst.msk [vmem:[#allocation2 + $0x40] sm:$0xff] %vm131_vm3, %v2451_v7  ;;  %v1418_v34 = vpop.permute.xlu0 %1417  ;;  %v1466_v35 = vld [vmem:[#allocation2 + $0x38] sm:$0xff] }
 0xd09   :  { %1426 = vst.msk [vmem:[#allocation2 + $0x18] sm:$0xff] %vm1177_vm7, %v1418_v34  ;;  %1521 = vrot.lane.b32.xlu0 %v1466_v35, %s2455_s23 }
 0xd0a   :  { %1651 = vst.msk [vmem:[#allocation2 + $0x38] sm:$0xff] %vm131_vm3, %v2451_v7  ;;  %v1416_v36 = vpop.permute.xlu1 %1415  ;;  %v1465_v37 = vld [vmem:[#allocation2 + $0x30] sm:$0xff] }
 0xd0b   :  { %1425 = vst.msk [vmem:[#allocation2 + $0x10] sm:$0xff] %vm1177_vm7, %v1416_v36  ;;  %1519 = vrot.lane.b32.xlu1 %v1465_v37, %s2455_s23 }
 0xd0c   :  { %1650 = vst.msk [vmem:[#allocation2 + $0x30] sm:$0xff] %vm131_vm3, %v2451_v7  ;;  %v1414_v38 = vpop.permute.xlu0 %1413  ;;  %v1464_v39 = vld [vmem:[#allocation2 + $0x28] sm:$0xff] }
 0xd0d   :  { %1424 = vst.msk [vmem:[#allocation2 + $0x8] sm:$0xff] %vm1177_vm7, %v1414_v38  ;;  %1517 = vrot.lane.b32.xlu0 %v1464_v39, %s2455_s23 }
 0xd0e   :  { %1649 = vst.msk [vmem:[#allocation2 + $0x28] sm:$0xff] %vm131_vm3, %v2451_v7  ;;  %v1412_v40 = vpop.permute.xlu1 %1411  ;;  %v1463_v41 = vld [vmem:[#allocation2 + $0x20] sm:$0xff] }
 0xd0f   :  { %1423 = vst.msk [vmem:[#allocation2] sm:$0xff] %vm1177_vm7, %v1412_v40  ;;  %1515 = vrot.lane.b32.xlu1 %v1463_v41, %s2455_s23 }
 0xd10   :  { %1648 = vst.msk [vmem:[#allocation2 + $0x20] sm:$0xff] %vm131_vm3, %v2451_v7  ;;  %v1462_v42 = vld [vmem:[#allocation2 + $0x18] sm:$0xff] }
 0xd11   :  { %1513 = vrot.lane.b32.xlu0 %v1462_v42, %s2455_s23  ;;  %1647 = vst.msk [vmem:[#allocation2 + $0x18] sm:$0xff] %vm131_vm3, %v2451_v7 }
 0xd12   :  { %v1461_v43 = vld [vmem:[#allocation2 + $0x10] sm:$0xff] }
 0xd13   :  { %1511 = vrot.lane.b32.xlu1 %v1461_v43, %s2455_s23  ;;  %1646 = vst.msk [vmem:[#allocation2 + $0x10] sm:$0xff] %vm131_vm3, %v2451_v7  ;;  %v1735_v43 = vld [vmem:[#allocation5 + $0xb8] sm:$0xff] }
 0xd14   :  { %v1460_v44 = vld [vmem:[#allocation2 + $0x8] sm:$0xff] }
 0xd15   :  { %1509 = vrot.lane.b32.xlu0 %v1460_v44, %s2455_s23  ;;  %1645 = vst.msk [vmem:[#allocation2 + $0x8] sm:$0xff] %vm131_vm3, %v2451_v7  ;;  %v1875_v44 = vld [vmem:[#allocation5 + $0xc0] sm:$0x3] }
 0xd16   :  { %v1459_v45 = vld [vmem:[#allocation2] sm:$0xff] }
 0xd17   :  { %1507 = vrot.lane.b32.xlu1 %v1459_v45, %s2455_s23  ;;  %1644 = vst.msk [vmem:[#allocation2] sm:$0xff] %vm131_vm3, %v2451_v7  ;;  %vm1656_vm3 = vcmask 195768  }
 0xd18   :  { %1668 = vst.msk [vmem:[#allocation2 + $0x58] sm:$0xff] %vm1656_vm3, %v2451_v7  ;;  %1657 = vst.msk [vmem:[#allocation2] sm:$0xff] %vm1656_vm3, %v2451_v7 }
 0xd19   :  { %1492 = vperm.xlu0 %2396, %v1474_v46   ;;  %1658 = vst.msk [vmem:[#allocation2 + $0x8] sm:$0xff] %vm1656_vm3, %v2451_v7  ;;  %1659 = vst.msk [vmem:[#allocation2 + $0x10] sm:$0xff] %vm1656_vm3, %v2451_v7 }
 0xd1a   :  { %1660 = vst.msk [vmem:[#allocation2 + $0x18] sm:$0xff] %vm1656_vm3, %v2451_v7  ;;  %1661 = vst.msk [vmem:[#allocation2 + $0x20] sm:$0xff] %vm1656_vm3, %v2451_v7 }
 0xd1b   :  { %1487 = vperm.xlu1 %2395, %v1473_v47   ;;  %1662 = vst.msk [vmem:[#allocation2 + $0x28] sm:$0xff] %vm1656_vm3, %v2451_v7  ;;  %1663 = vst.msk [vmem:[#allocation2 + $0x30] sm:$0xff] %vm1656_vm3, %v2451_v7 }
 0xd1c   :  { %1664 = vst.msk [vmem:[#allocation2 + $0x38] sm:$0xff] %vm1656_vm3, %v2451_v7  ;;  %1665 = vst.msk [vmem:[#allocation2 + $0x40] sm:$0xff] %vm1656_vm3, %v2451_v7 }
 0xd1d   :  { %1482 = vperm.xlu0 %2396, %v1472_v48   ;;  %1666 = vst.msk [vmem:[#allocation2 + $0x48] sm:$0xff] %vm1656_vm3, %v2451_v7  ;;  %1667 = vst.msk [vmem:[#allocation2 + $0x50] sm:$0xff] %vm1656_vm3, %v2451_v7 }
 0xd1f   :  { %1477 = vperm.xlu1 %2395, %v2820_v17  }
 0xd73   :  { %v1530_v49 = vpop.permute.xlu0 %1529 }
 0xd74   :  { %2318 = vmatprep.subr.mxu0 %v1530_v49 }
 0xd75   :  { %2319 = vmatpush3.msra.mxu0 %v1530_v49  ;;  %v1528_v50 = vpop.permute.xlu1 %1527 }
 0xd76   :  { %2320 = vmatprep.subr.mxu0 %v1528_v50 }
 0xd77   :  { %v1526_v51 = vpop.permute.xlu0 %1525  ;;  %2321 = vmatpush3.msra.mxu0 %v1528_v50 }
 0xd78   :  { %2322 = vmatprep.subr.mxu0 %v1526_v51 }
 0xd79   :  { %2323 = vmatpush3.msra.mxu0 %v1526_v51  ;;  %v1524_v52 = vpop.permute.xlu1 %1523 }
 0xd7a   :  { %2324 = vmatprep.subr.mxu0 %v1524_v52 }
 0xd7b   :  { %v1522_v53 = vpop.permute.xlu0 %1521  ;;  %2325 = vmatpush3.msra.mxu0 %v1524_v52 }
 0xd7c   :  { %2326 = vmatprep.subr.mxu0 %v1522_v53 }
 0xd7d   :  { %2327 = vmatpush3.msra.mxu0 %v1522_v53  ;;  %v1520_v54 = vpop.permute.xlu1 %1519 }
 0xd7e   :  { %2328 = vmatprep.subr.mxu0 %v1520_v54 }
 0xd7f   :  { %v1518_v55 = vpop.permute.xlu0 %1517  ;;  %2329 = vmatpush3.msra.mxu0 %v1520_v54 }
 0xd80   :  { %2330 = vmatprep.subr.mxu0 %v1518_v55 }
 0xd81   :  { %2331 = vmatpush3.msra.mxu0 %v1518_v55  ;;  %v1516_v56 = vpop.permute.xlu1 %1515 }
 0xd82   :  { %2332 = vmatprep.subr.mxu0 %v1516_v56 }
 0xd83   :  { %v1514_v57 = vpop.permute.xlu0 %1513  ;;  %2333 = vmatpush3.msra.mxu0 %v1516_v56 }
 0xd84   :  { %2334 = vmatprep.subr.mxu0 %v1514_v57 }
 0xd85   :  { %2335 = vmatpush3.msra.mxu0 %v1514_v57  ;;  %v1512_v58 = vpop.permute.xlu1 %1511 }
 0xd86   :  { %2336 = vmatprep.subr.mxu0 %v1512_v58 }
 0xd87   :  { %v1510_v59 = vpop.permute.xlu0 %1509  ;;  %2337 = vmatpush3.msra.mxu0 %v1512_v58 }
 0xd88   :  { %2338 = vmatprep.subr.mxu0 %v1510_v59 }
 0xd89   :  { %2339 = vmatpush3.msra.mxu0 %v1510_v59  ;;  %v1508_v60 = vpop.permute.xlu1 %1507 }
 0xd8a   :  { %2340 = vmatprep.subr.mxu0 %v1508_v60 }
 0xd8b   :  { %2341 = vmatpush3.msra.mxu0 %v1508_v60 }
 0xd8c   :  { %2343 = vmatmul.mubr.msk.f32.vlgmr.msra.gmra.mxu0 %vm801_vm5, %v1472_v48  ;;  %2375 = vmatprep.subr.mxu0 %v2451_v7 }
 0xd8d   :  { %2345 = vmatprep.mubr.msk.f32.mxu0 %vm801_vm5, %v1473_v47 }
 0xd90   :  { %2346 = vmatmul.mubr.msk.f32.gmra.mxu0 %vm801_vm5, %v1474_v46 }
 0xd91   :  { %2379 = vmatprep.mubr.msk.f32.mxu0 %vm2452_vm1, %v2451_v7  ;;  %vm1717_vm1 = vcmask 187448  }
 0xd94   :  { %v1493_v61 = vpop.permute.xlu0 %1492 }
 0xd96   :  { %v1488_v62 = vpop.permute.xlu1 %1487 }
 0xd98   :  { %v1483_v1 = vpop.permute.xlu0 %1482 }
 0xd9a   :  { %v1478_v5 = vpop.permute.xlu1 %1477 }
 0xe4c   :  { %v2344_v63 = vpop.f32.mrf.mxu0 }
 0xe4d   :  { %v1623_v3 = vadd.f32 %v2344_v63, %v1483_v1 }
 0xe4e   :  { %v1617_v0 = vpop.f32.mrf.mxu0 }
 0xe4f   :  { %v1618_v8 = vadd.f32 %v1617_v0, %v1478_v5  ;;  %v1637_v11 = vadd.f32 %v1623_v3, %v2726_v22 }
 0xe50   :  { %v2347_v2 = vpop.f32.mrf.mxu0 }
 0xe51   :  { %v1633_v4 = vadd.f32 %v2347_v2, %v1493_v61  ;;  %v1636_v14 = vadd.f32 %v1618_v8, %v2730_v23  ;;  %v1641_v16 = vmax.f32 %v1637_v11, 0.0 }
 0xe52   :  { %v1627_v6 = vpop.f32.mrf.mxu0 }
 0xe53   :  { %v1639_v9 = vadd.f32 %v1633_v4, %v2718_v18  ;;  %v1628_v10 = vadd.f32 %v1627_v6, %v1488_v62  ;;  %v1640_v17 = vmax.f32 %v1636_v14, 0.0  ;;  %v1734_v18 = vld [vmem:[#allocation5 + $0xb0] sm:$0xff] }
 0xe54   :  { %2372 = vmatprep.mubr.msk.f32.mxu1 %vm801_vm5, %v1734_v18 }
 0xe55   :  { %v1643_v12 = vmax.f32 %v1639_v9, 0.0  ;;  %v1638_v13 = vadd.f32 %v1628_v10, %v2722_v21 }
 0xe57   :  { %v1642_v15 = vmax.f32 %v1638_v13, 0.0  ;;  %1711 = vrot.lane.b32.xlu0 %v1643_v12, %s2454_s22  ;;  %v1976_v13 = vlaneseq }
 0xe59   :  { %1709 = vrot.lane.b32.xlu1 %v1642_v15, %s2454_s22  ;;  %v1977_v14 = vshrl.u32 %v1976_v13, 7 }
 0xe5b   :  { %1707 = vrot.lane.b32.xlu0 %v1641_v16, %s2454_s22 }
 0xe5d   :  { %1705 = vrot.lane.b32.xlu1 %v1640_v17, %s2454_s22 }
 0xe5f   :  { %1695 = vrot.lane.b32.xlu0 %v1643_v12, %s2450_s18 }
 0xe61   :  { %1693 = vrot.lane.b32.xlu1 %v1642_v15, %s2450_s18 }
 0xe63   :  { %1691 = vrot.lane.b32.xlu0 %v1641_v16, %s2450_s18 }
 0xe65   :  { %1689 = vrot.lane.b32.xlu1 %v1640_v17, %s2450_s18 }
 0xe67   :  { %1679 = vrot.lane.b32.xlu0 %v1643_v12, %s2453_s21 }
 0xe69   :  { %1677 = vrot.lane.b32.xlu1 %v1642_v15, %s2453_s21  ;;  %v1978_v15 = vsub.s32 0, %v1977_v14 }
 0xe6b   :  { %1675 = vrot.lane.b32.xlu0 %v1641_v16, %s2453_s21  ;;  %v1983_v16 = vsub.s32 1, %v1977_v14 }
 0xe6d   :  { %1673 = vrot.lane.b32.xlu1 %v1640_v17, %s2453_s21  ;;  %v1974_v17 = vld [vmem:[#allocation5 + $0xd0] sm:$0x7] }
 0xec9   :  { %v1712_v21 = vpop.permute.xlu0 %1711 }
 0xeca   :  { %1721 = vst.msk [vmem:[#allocation2 + $0x58] sm:$0xff] %vm1717_vm1, %v1712_v21  ;;  %v1989_v21 = vsub.s32 2, %v1977_v14 }
 0xecb   :  { %v1710_v22 = vpop.permute.xlu1 %1709 }
 0xecc   :  { %1720 = vst.msk [vmem:[#allocation2 + $0x50] sm:$0xff] %vm1717_vm1, %v1710_v22 }
 0xecd   :  { %v1708_v23 = vpop.permute.xlu0 %1707 }
 0xece   :  { %1719 = vst.msk [vmem:[#allocation2 + $0x48] sm:$0xff] %vm1717_vm1, %v1708_v23 }
 0xecf   :  { %v1706_v19 = vpop.permute.xlu1 %1705 }
 0xed0   :  { %1718 = vst.msk [vmem:[#allocation2 + $0x40] sm:$0xff] %vm1717_vm1, %v1706_v19  ;;  %v1984_v19 = vrot.slane %v1974_v17, %v1983_v16 }
 0xed1   :  { %v1696_v20 = vpop.permute.xlu0 %1695  ;;  %v1733_v27 = vld [vmem:[#allocation2 + $0x58] sm:$0xff] }
 0xed2   :  { %1704 = vst.msk [vmem:[#allocation2 + $0x38] sm:$0xff] %vm712_vm0, %v1696_v20  ;;  %1780 = vrot.lane.b32.xlu0 %v1733_v27, %s2455_s23 }
 0xed3   :  { %v1694_v28 = vpop.permute.xlu1 %1693  ;;  %v1732_v29 = vld [vmem:[#allocation2 + $0x50] sm:$0xff] }
 0xed4   :  { %1703 = vst.msk [vmem:[#allocation2 + $0x30] sm:$0xff] %vm712_vm0, %v1694_v28  ;;  %1778 = vrot.lane.b32.xlu1 %v1732_v29, %s2455_s23  ;;  %v1990_v28 = vrot.slane %v1974_v17, %v1989_v21 }
 0xed5   :  { %v1692_v24 = vpop.permute.xlu0 %1691  ;;  %v1731_v25 = vld [vmem:[#allocation2 + $0x48] sm:$0xff] }
 0xed6   :  { %1702 = vst.msk [vmem:[#allocation2 + $0x28] sm:$0xff] %vm712_vm0, %v1692_v24  ;;  %1776 = vrot.lane.b32.xlu0 %v1731_v25, %s2455_s23 }
 0xed7   :  { %v1690_v26 = vpop.permute.xlu1 %1689  ;;  %v1730_v30 = vld [vmem:[#allocation2 + $0x40] sm:$0xff] }
 0xed8   :  { %1701 = vst.msk [vmem:[#allocation2 + $0x20] sm:$0xff] %vm712_vm0, %v1690_v26  ;;  %1774 = vrot.lane.b32.xlu1 %v1730_v30, %s2455_s23 }
 0xed9   :  { %v1680_v31 = vpop.permute.xlu0 %1679  ;;  %v1729_v32 = vld [vmem:[#allocation2 + $0x38] sm:$0xff] }
 0xeda   :  { %1688 = vst.msk [vmem:[#allocation2 + $0x18] sm:$0xff] %vm695_vm2, %v1680_v31  ;;  %1772 = vrot.lane.b32.xlu0 %v1729_v32, %s2455_s23  ;;  %v2046_v31 = vld [vmem:[#allocation5 + $0xd3] ss:$0 sm:$0xff] }
 0xedb   :  { %v1678_v33 = vpop.permute.xlu1 %1677  ;;  %v1728_v34 = vld [vmem:[#allocation2 + $0x30] sm:$0xff] }
 0xedc   :  { %1687 = vst.msk [vmem:[#allocation2 + $0x10] sm:$0xff] %vm695_vm2, %v1678_v33  ;;  %1770 = vrot.lane.b32.xlu1 %v1728_v34, %s2455_s23 }
 0xedd   :  { %v1676_v35 = vpop.permute.xlu0 %1675  ;;  %v1727_v36 = vld [vmem:[#allocation2 + $0x28] sm:$0xff] }
 0xede   :  { %1686 = vst.msk [vmem:[#allocation2 + $0x8] sm:$0xff] %vm695_vm2, %v1676_v35  ;;  %1768 = vrot.lane.b32.xlu0 %v1727_v36, %s2455_s23 }
 0xedf   :  { %v1674_v37 = vpop.permute.xlu1 %1673  ;;  %v1726_v38 = vld [vmem:[#allocation2 + $0x20] sm:$0xff] }
 0xee0   :  { %1685 = vst.msk [vmem:[#allocation2] sm:$0xff] %vm695_vm2, %v1674_v37  ;;  %1766 = vrot.lane.b32.xlu1 %v1726_v38, %s2455_s23 }
 0xee1   :  { %v1725_v39 = vld [vmem:[#allocation2 + $0x18] sm:$0xff] }
 0xee2   :  { %1764 = vrot.lane.b32.xlu0 %v1725_v39, %s2455_s23 }
 0xee3   :  { %v1724_v40 = vld [vmem:[#allocation2 + $0x10] sm:$0xff] }
 0xee4   :  { %1762 = vrot.lane.b32.xlu1 %v1724_v40, %s2455_s23 }
 0xee5   :  { %v1723_v41 = vld [vmem:[#allocation2 + $0x8] sm:$0xff] }
 0xee6   :  { %1760 = vrot.lane.b32.xlu0 %v1723_v41, %s2455_s23 }
 0xee7   :  { %v1722_v42 = vld [vmem:[#allocation2] sm:$0xff] }
 0xee8   :  { %1758 = vrot.lane.b32.xlu1 %v1722_v42, %s2455_s23 }
 0xeea   :  { %1743 = vperm.xlu0 %2396, %v1735_v43  }
 0xeec   :  { %1738 = vperm.xlu1 %2395, %v1734_v18   ;;  %v1979_v18 = vrot.slane %v1974_v17, %v1978_v15 }
 0xeee   :  { %1878 = vperm.xlu0 %2396, %v1875_v44  }
 0xf44   :  { %v1781_v45 = vpop.permute.xlu0 %1780 }
 0xf45   :  { %2348 = vmatprep.subr.mxu1 %v1781_v45 }
 0xf46   :  { %2349 = vmatpush3.msra.mxu1 %v1781_v45  ;;  %v1779_v46 = vpop.permute.xlu1 %1778 }
 0xf47   :  { %2350 = vmatprep.subr.mxu1 %v1779_v46 }
 0xf48   :  { %v1777_v47 = vpop.permute.xlu0 %1776  ;;  %2351 = vmatpush3.msra.mxu1 %v1779_v46 }
 0xf49   :  { %2352 = vmatprep.subr.mxu1 %v1777_v47 }
 0xf4a   :  { %2353 = vmatpush3.msra.mxu1 %v1777_v47  ;;  %v1775_v48 = vpop.permute.xlu1 %1774 }
 0xf4b   :  { %2354 = vmatprep.subr.mxu1 %v1775_v48 }
 0xf4c   :  { %v1773_v49 = vpop.permute.xlu0 %1772  ;;  %2355 = vmatpush3.msra.mxu1 %v1775_v48 }
 0xf4d   :  { %2356 = vmatprep.subr.mxu1 %v1773_v49 }
 0xf4e   :  { %2357 = vmatpush3.msra.mxu1 %v1773_v49  ;;  %v1771_v50 = vpop.permute.xlu1 %1770 }
 0xf4f   :  { %2358 = vmatprep.subr.mxu1 %v1771_v50 }
 0xf50   :  { %v1769_v51 = vpop.permute.xlu0 %1768  ;;  %2359 = vmatpush3.msra.mxu1 %v1771_v50 }
 0xf51   :  { %2360 = vmatprep.subr.mxu1 %v1769_v51 }
 0xf52   :  { %2361 = vmatpush3.msra.mxu1 %v1769_v51  ;;  %v1767_v52 = vpop.permute.xlu1 %1766 }
 0xf53   :  { %2362 = vmatprep.subr.mxu1 %v1767_v52 }
 0xf54   :  { %v1765_v53 = vpop.permute.xlu0 %1764  ;;  %2363 = vmatpush3.msra.mxu1 %v1767_v52 }
 0xf55   :  { %2364 = vmatprep.subr.mxu1 %v1765_v53 }
 0xf56   :  { %2365 = vmatpush3.msra.mxu1 %v1765_v53  ;;  %v1763_v54 = vpop.permute.xlu1 %1762 }
 0xf57   :  { %2366 = vmatprep.subr.mxu1 %v1763_v54 }
 0xf58   :  { %v1761_v55 = vpop.permute.xlu0 %1760  ;;  %2367 = vmatpush3.msra.mxu1 %v1763_v54 }
 0xf59   :  { %2368 = vmatprep.subr.mxu1 %v1761_v55 }
 0xf5a   :  { %2369 = vmatpush3.msra.mxu1 %v1761_v55  ;;  %v1759_v56 = vpop.permute.xlu1 %1758 }
 0xf5b   :  { %2370 = vmatprep.subr.mxu1 %v1759_v56 }
 0xf5c   :  { %2371 = vmatpush3.msra.mxu1 %v1759_v56 }
 0xf5d   :  { %2373 = vmatmul.mubr.msk.f32.vlgmr.msra.gmra.mxu1 %vm801_vm5, %v1735_v43 }
 0xf65   :  { %v1744_v57 = vpop.permute.xlu0 %1743 }
 0xf67   :  { %v1739_v60 = vpop.permute.xlu1 %1738 }
 0xf69   :  { %v1879_v1 = vpop.permute.xlu0 %1878 }
0x101d   :  { %v2374_v58 = vpop.f32.mrf.mxu1 }
0x101e   :  { %v1870_v59 = vadd.f32 %v2374_v58, %v1744_v57 }
0x101f   :  { %v1864_v61 = vpop.f32.mrf.mxu1 }
0x1020   :  { %v1874_v62 = vmax.f32 %v1870_v59, 0.0  ;;  %v1865_v63 = vadd.f32 %v1864_v61, %v1739_v60 }
0x1022   :  { %v1873_v0 = vmax.f32 %v1865_v63, 0.0  ;;  %2376 = vmatpush3.msra.mxu0 %v1874_v62 }
0x1023   :  { %2377 = vmatprep.subr.mxu0 %v2451_v7 }
0x1024   :  { %2378 = vmatpush3.msra.mxu0 %v1873_v0 }
0x1025   :  { %2380 = vmatmul.mubr.msk.f32.vlgmr.msra.gmra.mxu0 %vm1881_vm8, %v1875_v44 }
0x10e5   :  { %v1950_v2 = vpop.f32.mrf.mxu0 }
0x10e6   :  { %v1951_v3 = vadd.f32 %v1950_v2, %v1879_v1 }
0x10e7   :  { %v2381_v4 = vpop.f32.mrf.mxu0 }
0x10e8   :  { %v2045_v5 = vmul.f32 -1.442695, %v1951_v3 }
0x10ea   :  { %2399 = vpow2.f32 %v2045_v5 }
0x10f7   :  { %v2400_v6 = vpop.eup %2399 }
0x10f8   :  { %v1957_v8 = vadd.f32 1.0, %v2400_v6 }
0x10fa   :  { %2401 = vrcp.f32 %v1957_v8 }
0x1107   :  { %v2402_v9 = vpop.eup %2401 }
0x1108   :  { %v1966_v10 = vsel %vm1960_vm9, %v2402_v9, -inf  ;;  %1999 = vst.msk [vmem:[%s2938_s2] sm:$0x3] %vm1960_vm9, %v2402_v9  ;;  %v1961_v11 = vsel %vm1960_vm9, %v2402_v9, 0.0  ;;  %v1969_v7 = vmul.f32 %v2402_v9, %v2402_v9 }
0x1109   :  { %1967 = vmax.xlane.f32.xlu0 %v1966_v10  ;;  %1962 = vadd.xlane.f32.xlu1 %v1961_v11 }
0x110a   :  { %v1970_v12 = vsel %vm1960_vm9, %v1969_v7, 0.0 }
0x110d   :  { %1971 = vadd.xlane.f32.xlu0 %v1970_v12 }
0x1192   :  { %v1968_v22 = vpop.xlane.xlu0 %1967  ;;  %v1963_v23 = vpop.xlane.xlu1 %1962 }
0x1193   :  { %v1965_v20 = vmul.f32 0.0625, %v1963_v23  ;;  %v1985_v24 = vmul.f32 %v1984_v19, %v1968_v22 }
0x1195   :  { %v1980_v27 = vmul.f32 %v1979_v18, %v1965_v20 }
0x1196   :  { %v1972_v29 = vpop.xlane.xlu0 %1971 }
0x1197   :  { %v1973_v25 = vmul.f32 0.0625, %v1972_v29  ;;  %v1986_v26 = vadd.f32 %v1985_v24, %v1980_v27 }
0x1199   :  { %v1991_v30 = vmul.f32 %v1990_v28, %v1973_v25 }
0x119b   :  { %v1992_v32 = vadd.f32 %v1991_v30, %v1986_v26 }
0x119d   :  { %v1997_v33 = vadd.f32 %v2046_v31, %v1992_v32 }
0x119f   :  { %2001 = vrot.lane.b32.xlu1 %v1997_v33, %s2459_s28 }
0x1211   :  { %v2002_v34 = vpop.permute.xlu1 %2001 }
0x1212   :  { %2005 = vst.msk [vmem:[%s2938_s2] sm:$0x3] %vm2004_vm10, %v2002_v34 }
0x1213   :  { %2010 = vsyncpa [#allocation4], 1 }
0x1214   :  { %2011 = vsyncpa [#allocation6], 1 }

</bundles_post_ra>
